<compile_context>
chip_gen: v7x
topology: tpu7x:2x2x1
jax: 0.10.0
libtpu: 0.0.40
codegen_flags: <defaults>
</compile_context>

<pallas_src>
import functools

import jax
import jax.numpy as jnp
from jax.experimental import pallas as pl
from jax.experimental.pallas import tpu as pltpu

NEG_SLOPE = 0.01  # nn.LeakyReLU default


def _lrelu(x):
    return jnp.where(x >= 0, x, NEG_SLOPE * x)


def _compiler_params(dim_sem, est_bytes):
    # Size the scoped VMEM limit from the actual block footprint (clamped to a
    # range that is valid on v5e/v6e/v7x).
    vmem = int(min(max(2 * est_bytes + (4 << 20), 16 << 20), 48 << 20))
    return pltpu.CompilerParams(dimension_semantics=dim_sem,
                                vmem_limit_bytes=vmem)


# ---------------------------------------------------------------------------
# Kernel 1: BasicBlock head (bn=False, weighted_shortcut=True)
#   grid = (2, B) over the stacked left/right streams
# ---------------------------------------------------------------------------
def basic_block_kernel(x_ref, w1_ref, b1_ref, w2_ref, b2_ref, ws_ref, bs_ref,
                       out_ref, pad_ref, *, H, W, C):
    x = x_ref[...]                              # (H, W, C)

    # Build the zero-padded image inside the kernel (no wrapper-side jnp.pad).
    pad_ref[...] = jnp.zeros_like(pad_ref)
    pad_ref[1:H + 1, 1:W + 1, :] = x

    def im2col():
        cols = []
        for dy in range(3):
            for dx in range(3):
                cols.append(pad_ref[dy:dy + H, dx:dx + W, :])
        # (H, W, 9C) -> (H*W, 9C): tap-major / cin-minor columns, matching
        # the (3,3,Cin,Cout) -> (9*Cin, Cout) weight reshape done in glue.
        return jnp.concatenate(cols, axis=-1).reshape(H * W, 9 * C)

    # conv3x3 #1 + bias + leaky relu : one (H*W, 9C) x (9C, C) MXU matmul
    t1 = _lrelu(jnp.dot(im2col(), w1_ref[...],
                        preferred_element_type=jnp.float32) + b1_ref[0])

    # 1x1 weighted shortcut + bias
    sc = jnp.dot(x.reshape(H * W, C), ws_ref[...],
                 preferred_element_type=jnp.float32) + bs_ref[0]

    # conv3x3 #2 + bias : reuse the same padded scratch (border stays zero)
    pad_ref[1:H + 1, 1:W + 1, :] = t1.reshape(H, W, C)
    body = jnp.dot(im2col(), w2_ref[...],
                   preferred_element_type=jnp.float32) + b2_ref[0]

    # residual add + leaky relu
    out_ref[...] = _lrelu(sc + body).reshape(H, W, C)


def basic_block(x2, hp):
    # x2: (2, B, H, W, C) stacked left/right NHWC features
    _, B, H, W, C = x2.shape
    w1r = hp['w1'].reshape(9 * C, C)
    w2r = hp['w2'].reshape(9 * C, C)

    kernel = functools.partial(basic_block_kernel, H=H, W=W, C=C)
    fea_spec = pl.BlockSpec((None, None, H, W, C),
                            lambda s, b: (s, b, 0, 0, 0))
    est = 4 * (4 * H * W * C                 # in/out blocks (double-buffered)
               + 2 * H * W * 9 * C           # im2col patch temporaries
               + (H + 2) * (W + 2) * C       # padded scratch
               + 2 * 9 * C * C + C * C + 3 * C)
    return pl.pallas_call(
        kernel,
        out_shape=jax.ShapeDtypeStruct(x2.shape, jnp.float32),
        grid_spec=pltpu.PrefetchScalarGridSpec(
            num_scalar_prefetch=0,
            grid=(2, B),
            in_specs=[
                fea_spec,
                pl.BlockSpec((9 * C, C), lambda s, b: (0, 0)),
                pl.BlockSpec((1, C), lambda s, b: (0, 0)),
                pl.BlockSpec((9 * C, C), lambda s, b: (0, 0)),
                pl.BlockSpec((1, C), lambda s, b: (0, 0)),
                pl.BlockSpec((C, C), lambda s, b: (0, 0)),
                pl.BlockSpec((1, C), lambda s, b: (0, 0)),
            ],
            out_specs=fea_spec,
            scratch_shapes=[pltpu.VMEM((H + 2, W + 2, C), jnp.float32)],
        ),
        compiler_params=_compiler_params(("parallel", "parallel"), est),
    )(x2, w1r, hp['b1'], w2r, hp['b2'], hp['ws'], hp['bs'])


# ---------------------------------------------------------------------------
# Kernel 2: PAB attention (fused q/k projections + cost matmuls + residual)
#   grid = (B,), both streams handled in one invocation
# ---------------------------------------------------------------------------
def pab_attn_kernel(x_ref, f_ref, wqk_ref, bqk_ref, c0_ref, c1_ref,
                    o_ref, cr2l_ref, cl2r_ref, *, H, W, C):
    f = f_ref[...]                              # (2, H, W, C)  [left; right]

    # Fused query/key projection for both streams:
    #   one (2*H*W, C) x (C, 2C) matmul; cols [:C] -> query, [C:] -> key.
    proj = jnp.dot(f.reshape(2 * H * W, C), wqk_ref[...],
                   preferred_element_type=jnp.float32) + bqk_ref[0]
    proj = proj.reshape(2, H, W, 2 * C)
    Ql, Kl = proj[0, :, :, :C], proj[0, :, :, C:]
    Qr, Kr = proj[1, :, :, :C], proj[1, :, :, C:]

    inv_c = jnp.float32(1.0 / C)
    # cost[h, w, v] = sum_c Q[h, w, c] * K[h, v, c] / C + previous cost
    cr2l_ref[...] = (jnp.einsum('hwc,hvc->hwv', Ql, Kr,
                                preferred_element_type=jnp.float32) * inv_c
                     + c0_ref[...])
    cl2r_ref[...] = (jnp.einsum('hwc,hvc->hwv', Qr, Kl,
                                preferred_element_type=jnp.float32) * inv_c
                     + c1_ref[...])

    # feature residual update for both streams
    o_ref[...] = x_ref[...] + f


def pab_attention(x2, f2, p, cost0, cost1):
    _, B, H, W, C = x2.shape
    wqk = jnp.concatenate([p['wq'], p['wk']], axis=1)   # (C, 2C)
    bqk = jnp.concatenate([p['bq'], p['bk']], axis=1)   # (1, 2C)

    kernel = functools.partial(pab_attn_kernel, H=H, W=W, C=C)
    fea_spec = pl.BlockSpec((2, None, H, W, C), lambda b: (0, b, 0, 0, 0))
    cost_spec = pl.BlockSpec((None, H, W, W), lambda b: (b, 0, 0, 0))
    est = 4 * (6 * 2 * H * W * C             # x/f in + out feature blocks
               + 8 * H * W * W               # cost in/out blocks
               + 2 * H * W * 2 * C           # projection temporary
               + 2 * C * 2 * C)
    return pl.pallas_call(
        kernel,
        out_shape=(
            jax.ShapeDtypeStruct(x2.shape, jnp.float32),
            jax.ShapeDtypeStruct((B, H, W, W), jnp.float32),
            jax.ShapeDtypeStruct((B, H, W, W), jnp.float32),
        ),
        grid_spec=pltpu.PrefetchScalarGridSpec(
            num_scalar_prefetch=0,
            grid=(B,),
            in_specs=[fea_spec, fea_spec,
                      pl.BlockSpec((C, 2 * C), lambda b: (0, 0)),
                      pl.BlockSpec((1, 2 * C), lambda b: (0, 0)),
                      cost_spec, cost_spec],
            out_specs=(fea_spec, cost_spec, cost_spec),
        ),
        # accumulate in place: x2 -> updated features, cost0/1 -> updated costs
        input_output_aliases={0: 0, 4: 1, 5: 2},
        compiler_params=_compiler_params(("parallel",), est),
    )(x2, f2, wqk, bqk, cost0, cost1)


# ---------------------------------------------------------------------------
# PAM forward (glue): iterate PAB blocks on the stacked left/right tensor
# ---------------------------------------------------------------------------
@jax.jit
def pam_forward(fea_left_nchw, fea_right_nchw, cost, params_list):
    xl = jnp.transpose(fea_left_nchw, (0, 2, 3, 1))     # NCHW -> NHWC
    xr = jnp.transpose(fea_right_nchw, (0, 2, 3, 1))
    x2 = jnp.stack([xl, xr], axis=0)                    # (2, B, H, W, C)
    c0, c1 = cost
    for p in params_list:
        f2 = basic_block(x2, p['head'])
        x2, c0, c1 = pab_attention(x2, f2, p, c0, c1)
    out_l = jnp.transpose(x2[0], (0, 3, 1, 2))          # NHWC -> NCHW
    out_r = jnp.transpose(x2[1], (0, 3, 1, 2))
    return out_l, out_r, (c0, c1)


# ---------------------------------------------------------------------------
# Pure-JAX reference (for correctness check)
# ---------------------------------------------------------------------------
def _conv3x3_ref(x, w, b):
    y = jax.lax.conv_general_dilated(
        x, w, window_strides=(1, 1), padding='SAME',
        dimension_numbers=('NHWC', 'HWIO', 'NHWC'))
    return y + b


def _basic_block_ref(x, hp):
    t1 = _lrelu(_conv3x3_ref(x, hp['w1'], hp['b1']))
    body = _conv3x3_ref(t1, hp['w2'], hp['b2'])
    sc = jnp.einsum('bhwc,cd->bhwd', x, hp['ws']) + hp['bs']
    return _lrelu(sc + body)


def _pam_ref(fl_nchw, fr_nchw, cost, params_list):
    xl = jnp.transpose(fl_nchw, (0, 2, 3, 1))
    xr = jnp.transpose(fr_nchw, (0, 2, 3, 1))
    c0, c1 = cost
    C = xl.shape[-1]
    for p in params_list:
        fl = _basic_block_ref(xl, p['head'])
        fr = _basic_block_ref(xr, p['head'])
        Ql = jnp.einsum('bhwc,cd->bhwd', fl, p['wq']) + p['bq']
        Kr = jnp.einsum('bhwc,cd->bhwd', fr, p['wk']) + p['bk']
        Qr = jnp.einsum('bhwc,cd->bhwd', fr, p['wq']) + p['bq']
        Kl = jnp.einsum('bhwc,cd->bhwd', fl, p['wk']) + p['bk']
        c0 = jnp.einsum('bhwc,bhvc->bhwv', Ql, Kr) / C + c0
        c1 = jnp.einsum('bhwc,bhvc->bhwv', Qr, Kl) / C + c1
        xl = xl + fl
        xr = xr + fr
    return (jnp.transpose(xl, (0, 3, 1, 2)),
            jnp.transpose(xr, (0, 3, 1, 2)), (c0, c1))


# ---------------------------------------------------------------------------
# Deterministic parameter init
# ---------------------------------------------------------------------------
def init_pab_params(key, C):
    ks = jax.random.split(key, 10)
    s = 0.2
    head = {
        'w1': s * jax.random.normal(ks[0], (3, 3, C, C), jnp.float32),
        'b1': s * jax.random.normal(ks[1], (1, C), jnp.float32),
        'w2': s * jax.random.normal(ks[2], (3, 3, C, C), jnp.float32),
        'b2': s * jax.random.normal(ks[3], (1, C), jnp.float32),
        'ws': s * jax.random.normal(ks[4], (C, C), jnp.float32),
        'bs': s * jax.random.normal(ks[5], (1, C), jnp.float32),
    }
    return {
        'head': head,
        'wq': s * jax.random.normal(ks[6], (C, C), jnp.float32),
        'bq': s * jax.random.normal(ks[7], (1, C), jnp.float32),
        'wk': s * jax.random.normal(ks[8], (C, C), jnp.float32),
        'bk': s * jax.random.normal(ks[9], (1, C), jnp.float32),
    }


if __name__ == "__main__":
    B, C, H, W = 2, 4, 8, 8
    LAYERS = 2

    key = jax.random.PRNGKey(0)
    k_in, k_p = jax.random.split(key)
    k1, k2, k3, k4 = jax.random.split(k_in, 4)

    fea_left = jax.random.normal(k1, (B, C, H, W), jnp.float32)    # NCHW
    fea_right = jax.random.normal(k2, (B, C, H, W), jnp.float32)   # NCHW
    cost0 = 0.1 * jax.random.normal(k3, (B, H, W, W), jnp.float32)
    cost1 = 0.1 * jax.random.normal(k4, (B, H, W, W), jnp.float32)

    params_list = [init_pab_params(k, C) for k in jax.random.split(k_p, LAYERS)]

    out_l, out_r, (c0, c1) = pam_forward(fea_left, fea_right,
                                         (cost0, cost1), params_list)
    jax.block_until_ready((out_l, out_r, c0, c1))

    ref_l, ref_r, (rc0, rc1) = _pam_ref(fea_left, fea_right,
                                        (cost0, cost1), params_list)

    for a, b in ((out_l, ref_l), (out_r, ref_r), (c0, rc0), (c1, rc1)):
        assert jnp.allclose(a, b, atol=1e-4, rtol=1e-4), "mismatch vs reference"

    print("KERNEL_OK")
</pallas_src>

<mosaic_0001>
module attributes {stable_mosaic.version = 11 : i64} {
  func.func @basic_block_kernel(%arg0: i32, %arg1: i32, %arg2: memref<1x1x8x8x4xf32, #tpu.memory_space<vmem>>, %arg3: memref<36x4xf32, #tpu.memory_space<vmem>>, %arg4: memref<1x4xf32, #tpu.memory_space<vmem>>, %arg5: memref<36x4xf32, #tpu.memory_space<vmem>>, %arg6: memref<1x4xf32, #tpu.memory_space<vmem>>, %arg7: memref<4x4xf32, #tpu.memory_space<vmem>>, %arg8: memref<1x4xf32, #tpu.memory_space<vmem>>, %arg9: memref<1x1x8x8x4xf32, #tpu.memory_space<vmem>>, %arg10: memref<10x10x4xf32, #tpu.memory_space<vmem>>) attributes {dimension_semantics = [#tpu.dimension_semantics<parallel>, #tpu.dimension_semantics<parallel>], iteration_bounds = array<i64: 2, 2>, scalar_prefetch = 0 : i64, scratch_operands = 1 : i64, tpu.core_type = #tpu.core_type<tc>, window_params = [{transform_indices = @transform_0, window_bounds = array<i64: 1, 1, 8, 8, 4>}, {pipeline_mode = #tpu.pipeline_mode<synchronous>, transform_indices = @transform_1, window_bounds = array<i64: 36, 4>}, {pipeline_mode = #tpu.pipeline_mode<synchronous>, transform_indices = @transform_2, window_bounds = array<i64: 1, 4>}, {pipeline_mode = #tpu.pipeline_mode<synchronous>, transform_indices = @transform_3, window_bounds = array<i64: 36, 4>}, {pipeline_mode = #tpu.pipeline_mode<synchronous>, transform_indices = @transform_4, window_bounds = array<i64: 1, 4>}, {pipeline_mode = #tpu.pipeline_mode<synchronous>, transform_indices = @transform_5, window_bounds = array<i64: 4, 4>}, {pipeline_mode = #tpu.pipeline_mode<synchronous>, transform_indices = @transform_6, window_bounds = array<i64: 1, 4>}, {transform_indices = @transform_7, window_bounds = array<i64: 1, 1, 8, 8, 4>}]} {
    %c0 = arith.constant 0 : index
    %c0_0 = arith.constant 0 : index
    %c0_1 = arith.constant 0 : index
    %c0_2 = arith.constant 0 : index
    %c0_3 = arith.constant 0 : index
    %0 = vector.load %arg2[%c0, %c0_0, %c0_1, %c0_2, %c0_3] : memref<1x1x8x8x4xf32, #tpu.memory_space<vmem>>, vector<1x1x8x8x4xf32>
    %1 = vector.shape_cast %0 : vector<1x1x8x8x4xf32> to vector<8x8x4xf32>
    %cst = arith.constant 0.000000e+00 : f32
    %2 = vector.broadcast %cst : f32 to vector<10x10x4xf32>
    %c0_4 = arith.constant 0 : index
    %c0_5 = arith.constant 0 : index
    %c0_6 = arith.constant 0 : index
    %3 = vector.load %arg10[%c0_4, %c0_5, %c0_6] : memref<10x10x4xf32, #tpu.memory_space<vmem>>, vector<10x10x4xf32>
    tpu.vector_store %arg10[%c0_4, %c0_5, %c0_6], %2 {strides = array<i32>} : memref<10x10x4xf32, #tpu.memory_space<vmem>>, vector<10x10x4xf32>,
    %c1 = arith.constant 1 : index
    %c1_7 = arith.constant 1 : index
    %c0_8 = arith.constant 0 : index
    %4 = vector.load %arg10[%c1, %c1_7, %c0_8] : memref<10x10x4xf32, #tpu.memory_space<vmem>>, vector<8x8x4xf32>
    tpu.vector_store %arg10[%c1, %c1_7, %c0_8], %1 {strides = array<i32>} : memref<10x10x4xf32, #tpu.memory_space<vmem>>, vector<8x8x4xf32>,
    %c0_9 = arith.constant 0 : index
    %c0_10 = arith.constant 0 : index
    %c0_11 = arith.constant 0 : index
    %5 = vector.load %arg10[%c0_9, %c0_10, %c0_11] : memref<10x10x4xf32, #tpu.memory_space<vmem>>, vector<8x8x4xf32>
    %c0_12 = arith.constant 0 : index
    %c1_13 = arith.constant 1 : index
    %c0_14 = arith.constant 0 : index
    %6 = vector.load %arg10[%c0_12, %c1_13, %c0_14] : memref<10x10x4xf32, #tpu.memory_space<vmem>>, vector<8x8x4xf32>
    %c0_15 = arith.constant 0 : index
    %c2 = arith.constant 2 : index
    %c0_16 = arith.constant 0 : index
    %7 = vector.load %arg10[%c0_15, %c2, %c0_16] : memref<10x10x4xf32, #tpu.memory_space<vmem>>, vector<8x8x4xf32>
    %c1_17 = arith.constant 1 : index
    %c0_18 = arith.constant 0 : index
    %c0_19 = arith.constant 0 : index
    %8 = vector.load %arg10[%c1_17, %c0_18, %c0_19] : memref<10x10x4xf32, #tpu.memory_space<vmem>>, vector<8x8x4xf32>
    %c1_20 = arith.constant 1 : index
    %c1_21 = arith.constant 1 : index
    %c0_22 = arith.constant 0 : index
    %9 = vector.load %arg10[%c1_20, %c1_21, %c0_22] : memref<10x10x4xf32, #tpu.memory_space<vmem>>, vector<8x8x4xf32>
    %c1_23 = arith.constant 1 : index
    %c2_24 = arith.constant 2 : index
    %c0_25 = arith.constant 0 : index
    %10 = vector.load %arg10[%c1_23, %c2_24, %c0_25] : memref<10x10x4xf32, #tpu.memory_space<vmem>>, vector<8x8x4xf32>
    %c2_26 = arith.constant 2 : index
    %c0_27 = arith.constant 0 : index
    %c0_28 = arith.constant 0 : index
    %11 = vector.load %arg10[%c2_26, %c0_27, %c0_28] : memref<10x10x4xf32, #tpu.memory_space<vmem>>, vector<8x8x4xf32>
    %c2_29 = arith.constant 2 : index
    %c1_30 = arith.constant 1 : index
    %c0_31 = arith.constant 0 : index
    %12 = vector.load %arg10[%c2_29, %c1_30, %c0_31] : memref<10x10x4xf32, #tpu.memory_space<vmem>>, vector<8x8x4xf32>
    %c2_32 = arith.constant 2 : index
    %c2_33 = arith.constant 2 : index
    %c0_34 = arith.constant 0 : index
    %13 = vector.load %arg10[%c2_32, %c2_33, %c0_34] : memref<10x10x4xf32, #tpu.memory_space<vmem>>, vector<8x8x4xf32>
    %14 = tpu.concatenate %5, %6, %7, %8, %9, %10, %11, %12, %13 in 2 : vector<8x8x4xf32>, vector<8x8x4xf32>, vector<8x8x4xf32>, vector<8x8x4xf32>, vector<8x8x4xf32>, vector<8x8x4xf32>, vector<8x8x4xf32>, vector<8x8x4xf32>, vector<8x8x4xf32> -> vector<8x8x36xf32>
    %15 = vector.shape_cast %14 : vector<8x8x36xf32> to vector<64x36xf32>
    %c0_35 = arith.constant 0 : index
    %c0_36 = arith.constant 0 : index
    %16 = vector.load %arg3[%c0_35, %c0_36] : memref<36x4xf32, #tpu.memory_space<vmem>>, vector<36x4xf32>
    %cst_37 = arith.constant dense<0.000000e+00> : vector<64x4xf32>
    %17 = tpu.matmul %15, %16, %cst_37 {dimension_numbers = #tpu.dot_dimension_numbers<[1], [0], [0], [1], [0, 0, 1, 1], [], []>} : vector<64x36xf32>, vector<36x4xf32>, vector<64x4xf32> -> vector<64x4xf32>
    %c0_38 = arith.constant 0 : index
    %c0_39 = arith.constant 0 : index
    %18 = vector.load %arg4[%c0_38, %c0_39] : memref<1x4xf32, #tpu.memory_space<vmem>>, vector<1x4xf32>
    %19 = vector.shape_cast %18 : vector<1x4xf32> to vector<4xf32>
    %20 = vector.shape_cast %19 : vector<4xf32> to vector<1x4xf32>
    %21 = vector.broadcast %20 : vector<1x4xf32> to vector<64x4xf32>
    %22 = arith.addf %17, %21 : vector<64x4xf32>
    %cst_40 = arith.constant 0.000000e+00 : f32
    %23 = vector.broadcast %cst_40 : f32 to vector<64x4xf32>
    %24 = arith.cmpf oge, %22, %23 : vector<64x4xf32>
    %cst_41 = arith.constant 0.00999999977 : f32
    %25 = vector.broadcast %cst_41 : f32 to vector<64x4xf32>
    %26 = arith.mulf %25, %22 : vector<64x4xf32>
    %27 = arith.select %24, %22, %26 : vector<64x4xi1>, vector<64x4xf32>
    %28 = vector.shape_cast %1 : vector<8x8x4xf32> to vector<64x4xf32>
    %c0_42 = arith.constant 0 : index
    %c0_43 = arith.constant 0 : index
    %29 = vector.load %arg7[%c0_42, %c0_43] : memref<4x4xf32, #tpu.memory_space<vmem>>, vector<4x4xf32>
    %cst_44 = arith.constant dense<0.000000e+00> : vector<64x4xf32>
    %30 = tpu.matmul %28, %29, %cst_44 {dimension_numbers = #tpu.dot_dimension_numbers<[1], [0], [0], [1], [0, 0, 1, 1], [], []>} : vector<64x4xf32>, vector<4x4xf32>, vector<64x4xf32> -> vector<64x4xf32>
    %c0_45 = arith.constant 0 : index
    %c0_46 = arith.constant 0 : index
    %31 = vector.load %arg8[%c0_45, %c0_46] : memref<1x4xf32, #tpu.memory_space<vmem>>, vector<1x4xf32>
    %32 = vector.shape_cast %31 : vector<1x4xf32> to vector<4xf32>
    %33 = vector.shape_cast %32 : vector<4xf32> to vector<1x4xf32>
    %34 = vector.broadcast %33 : vector<1x4xf32> to vector<64x4xf32>
    %35 = arith.addf %30, %34 : vector<64x4xf32>
    %36 = vector.shape_cast %27 : vector<64x4xf32> to vector<8x8x4xf32>
    %c1_47 = arith.constant 1 : index
    %c1_48 = arith.constant 1 : index
    %c0_49 = arith.constant 0 : index
    %37 = vector.load %arg10[%c1_47, %c1_48, %c0_49] : memref<10x10x4xf32, #tpu.memory_space<vmem>>, vector<8x8x4xf32>
    tpu.vector_store %arg10[%c1_47, %c1_48, %c0_49], %36 {strides = array<i32>} : memref<10x10x4xf32, #tpu.memory_space<vmem>>, vector<8x8x4xf32>,
    %c0_50 = arith.constant 0 : index
    %c0_51 = arith.constant 0 : index
    %c0_52 = arith.constant 0 : index
    %38 = vector.load %arg10[%c0_50, %c0_51, %c0_52] : memref<10x10x4xf32, #tpu.memory_space<vmem>>, vector<8x8x4xf32>
    %c0_53 = arith.constant 0 : index
    %c1_54 = arith.constant 1 : index
    %c0_55 = arith.constant 0 : index
    %39 = vector.load %arg10[%c0_53, %c1_54, %c0_55] : memref<10x10x4xf32, #tpu.memory_space<vmem>>, vector<8x8x4xf32>
    %c0_56 = arith.constant 0 : index
    %c2_57 = arith.constant 2 : index
    %c0_58 = arith.constant 0 : index
    %40 = vector.load %arg10[%c0_56, %c2_57, %c0_58] : memref<10x10x4xf32, #tpu.memory_space<vmem>>, vector<8x8x4xf32>
    %c1_59 = arith.constant 1 : index
    %c0_60 = arith.constant 0 : index
    %c0_61 = arith.constant 0 : index
    %41 = vector.load %arg10[%c1_59, %c0_60, %c0_61] : memref<10x10x4xf32, #tpu.memory_space<vmem>>, vector<8x8x4xf32>
    %c1_62 = arith.constant 1 : index
    %c1_63 = arith.constant 1 : index
    %c0_64 = arith.constant 0 : index
    %42 = vector.load %arg10[%c1_62, %c1_63, %c0_64] : memref<10x10x4xf32, #tpu.memory_space<vmem>>, vector<8x8x4xf32>
    %c1_65 = arith.constant 1 : index
    %c2_66 = arith.constant 2 : index
    %c0_67 = arith.constant 0 : index
    %43 = vector.load %arg10[%c1_65, %c2_66, %c0_67] : memref<10x10x4xf32, #tpu.memory_space<vmem>>, vector<8x8x4xf32>
    %c2_68 = arith.constant 2 : index
    %c0_69 = arith.constant 0 : index
    %c0_70 = arith.constant 0 : index
    %44 = vector.load %arg10[%c2_68, %c0_69, %c0_70] : memref<10x10x4xf32, #tpu.memory_space<vmem>>, vector<8x8x4xf32>
    %c2_71 = arith.constant 2 : index
    %c1_72 = arith.constant 1 : index
    %c0_73 = arith.constant 0 : index
    %45 = vector.load %arg10[%c2_71, %c1_72, %c0_73] : memref<10x10x4xf32, #tpu.memory_space<vmem>>, vector<8x8x4xf32>
    %c2_74 = arith.constant 2 : index
    %c2_75 = arith.constant 2 : index
    %c0_76 = arith.constant 0 : index
    %46 = vector.load %arg10[%c2_74, %c2_75, %c0_76] : memref<10x10x4xf32, #tpu.memory_space<vmem>>, vector<8x8x4xf32>
    %47 = tpu.concatenate %38, %39, %40, %41, %42, %43, %44, %45, %46 in 2 : vector<8x8x4xf32>, vector<8x8x4xf32>, vector<8x8x4xf32>, vector<8x8x4xf32>, vector<8x8x4xf32>, vector<8x8x4xf32>, vector<8x8x4xf32>, vector<8x8x4xf32>, vector<8x8x4xf32> -> vector<8x8x36xf32>
    %48 = vector.shape_cast %47 : vector<8x8x36xf32> to vector<64x36xf32>
    %c0_77 = arith.constant 0 : index
    %c0_78 = arith.constant 0 : index
    %49 = vector.load %arg5[%c0_77, %c0_78] : memref<36x4xf32, #tpu.memory_space<vmem>>, vector<36x4xf32>
    %cst_79 = arith.constant dense<0.000000e+00> : vector<64x4xf32>
    %50 = tpu.matmul %48, %49, %cst_79 {dimension_numbers = #tpu.dot_dimension_numbers<[1], [0], [0], [1], [0, 0, 1, 1], [], []>} : vector<64x36xf32>, vector<36x4xf32>, vector<64x4xf32> -> vector<64x4xf32>
    %c0_80 = arith.constant 0 : index
    %c0_81 = arith.constant 0 : index
    %51 = vector.load %arg6[%c0_80, %c0_81] : memref<1x4xf32, #tpu.memory_space<vmem>>, vector<1x4xf32>
    %52 = vector.shape_cast %51 : vector<1x4xf32> to vector<4xf32>
    %53 = vector.shape_cast %52 : vector<4xf32> to vector<1x4xf32>
    %54 = vector.broadcast %53 : vector<1x4xf32> to vector<64x4xf32>
    %55 = arith.addf %50, %54 : vector<64x4xf32>
    %56 = arith.addf %35, %55 : vector<64x4xf32>
    %cst_82 = arith.constant 0.000000e+00 : f32
    %57 = vector.broadcast %cst_82 : f32 to vector<64x4xf32>
    %58 = arith.cmpf oge, %56, %57 : vector<64x4xf32>
    %cst_83 = arith.constant 0.00999999977 : f32
    %59 = vector.broadcast %cst_83 : f32 to vector<64x4xf32>
    %60 = arith.mulf %59, %56 : vector<64x4xf32>
    %61 = arith.select %58, %56, %60 : vector<64x4xi1>, vector<64x4xf32>
    %62 = vector.shape_cast %61 : vector<64x4xf32> to vector<8x8x4xf32>
    %c0_84 = arith.constant 0 : index
    %c0_85 = arith.constant 0 : index
    %c0_86 = arith.constant 0 : index
    %c0_87 = arith.constant 0 : index
    %c0_88 = arith.constant 0 : index
    %63 = vector.load %arg9[%c0_84, %c0_85, %c0_86, %c0_87, %c0_88] : memref<1x1x8x8x4xf32, #tpu.memory_space<vmem>>, vector<1x1x8x8x4xf32>
    %64 = vector.shape_cast %63 : vector<1x1x8x8x4xf32> to vector<8x8x4xf32>
    %65 = vector.shape_cast %62 : vector<8x8x4xf32> to vector<1x1x8x8x4xf32>
    tpu.vector_store %arg9[%c0_84, %c0_85, %c0_86, %c0_87, %c0_88], %65 {strides = array<i32>} : memref<1x1x8x8x4xf32, #tpu.memory_space<vmem>>, vector<1x1x8x8x4xf32>,
    return
  }
  func.func @transform_0(%arg0: i32, %arg1: i32) -> (i32, i32, i32, i32, i32) {
    %c0_i32 = arith.constant 0 : i32
    %c0_i32_0 = arith.constant 0 : i32
    %c0_i32_1 = arith.constant 0 : i32
    %c0_i32_2 = arith.constant 0 : i32
    return %arg0, %arg1, %c0_i32, %c0_i32_0, %c0_i32_1 : i32, i32, i32, i32, i32
  }
  func.func @transform_1(%arg0: i32, %arg1: i32) -> (i32, i32) {
    %c0_i32 = arith.constant 0 : i32
    %c0_i32_0 = arith.constant 0 : i32
    %c0_i32_1 = arith.constant 0 : i32
    return %c0_i32, %c0_i32_0 : i32, i32
  }
  func.func @transform_2(%arg0: i32, %arg1: i32) -> (i32, i32) {
    %c0_i32 = arith.constant 0 : i32
    %c0_i32_0 = arith.constant 0 : i32
    %c0_i32_1 = arith.constant 0 : i32
    return %c0_i32, %c0_i32_0 : i32, i32
  }
  func.func @transform_3(%arg0: i32, %arg1: i32) -> (i32, i32) {
    %c0_i32 = arith.constant 0 : i32
    %c0_i32_0 = arith.constant 0 : i32
    %c0_i32_1 = arith.constant 0 : i32
    return %c0_i32, %c0_i32_0 : i32, i32
  }
  func.func @transform_4(%arg0: i32, %arg1: i32) -> (i32, i32) {
    %c0_i32 = arith.constant 0 : i32
    %c0_i32_0 = arith.constant 0 : i32
    %c0_i32_1 = arith.constant 0 : i32
    return %c0_i32, %c0_i32_0 : i32, i32
  }
  func.func @transform_5(%arg0: i32, %arg1: i32) -> (i32, i32) {
    %c0_i32 = arith.constant 0 : i32
    %c0_i32_0 = arith.constant 0 : i32
    %c0_i32_1 = arith.constant 0 : i32
    return %c0_i32, %c0_i32_0 : i32, i32
  }
  func.func @transform_6(%arg0: i32, %arg1: i32) -> (i32, i32) {
    %c0_i32 = arith.constant 0 : i32
    %c0_i32_0 = arith.constant 0 : i32
    %c0_i32_1 = arith.constant 0 : i32
    return %c0_i32, %c0_i32_0 : i32, i32
  }
  func.func @transform_7(%arg0: i32, %arg1: i32) -> (i32, i32, i32, i32, i32) {
    %c0_i32 = arith.constant 0 : i32
    %c0_i32_0 = arith.constant 0 : i32
    %c0_i32_1 = arith.constant 0 : i32
    %c0_i32_2 = arith.constant 0 : i32
    return %arg0, %arg1, %c0_i32, %c0_i32_0, %c0_i32_1 : i32, i32, i32, i32, i32
  }
}

module attributes {stable_mosaic.version = 11 : i64} {
  func.func @pab_attn_kernel(%arg0: i32, %arg1: memref<2x1x8x8x4xf32, #tpu.memory_space<vmem>>, %arg2: memref<2x1x8x8x4xf32, #tpu.memory_space<vmem>>, %arg3: memref<4x8xf32, #tpu.memory_space<vmem>>, %arg4: memref<1x8xf32, #tpu.memory_space<vmem>>, %arg5: memref<1x8x8x8xf32, #tpu.memory_space<vmem>>, %arg6: memref<1x8x8x8xf32, #tpu.memory_space<vmem>>, %arg7: memref<2x1x8x8x4xf32, #tpu.memory_space<vmem>>, %arg8: memref<1x8x8x8xf32, #tpu.memory_space<vmem>>, %arg9: memref<1x8x8x8xf32, #tpu.memory_space<vmem>>) attributes {dimension_semantics = [#tpu.dimension_semantics<parallel>], iteration_bounds = array<i64: 2>, scalar_prefetch = 0 : i64, scratch_operands = 0 : i64, tpu.core_type = #tpu.core_type<tc>, window_params = [{transform_indices = @transform_0, window_bounds = array<i64: 2, 1, 8, 8, 4>}, {transform_indices = @transform_1, window_bounds = array<i64: 2, 1, 8, 8, 4>}, {pipeline_mode = #tpu.pipeline_mode<synchronous>, transform_indices = @transform_2, window_bounds = array<i64: 4, 8>}, {pipeline_mode = #tpu.pipeline_mode<synchronous>, transform_indices = @transform_3, window_bounds = array<i64: 1, 8>}, {transform_indices = @transform_4, window_bounds = array<i64: 1, 8, 8, 8>}, {transform_indices = @transform_5, window_bounds = array<i64: 1, 8, 8, 8>}, {transform_indices = @transform_6, window_bounds = array<i64: 2, 1, 8, 8, 4>}, {transform_indices = @transform_7, window_bounds = array<i64: 1, 8, 8, 8>}, {transform_indices = @transform_8, window_bounds = array<i64: 1, 8, 8, 8>}]} {
    %c0 = arith.constant 0 : index
    %c0_0 = arith.constant 0 : index
    %c0_1 = arith.constant 0 : index
    %c0_2 = arith.constant 0 : index
    %c0_3 = arith.constant 0 : index
    %0 = vector.load %arg2[%c0, %c0_0, %c0_1, %c0_2, %c0_3] : memref<2x1x8x8x4xf32, #tpu.memory_space<vmem>>, vector<2x1x8x8x4xf32>
    %1 = vector.shape_cast %0 : vector<2x1x8x8x4xf32> to vector<2x8x8x4xf32>
    %2 = vector.shape_cast %1 : vector<2x8x8x4xf32> to vector<128x4xf32>
    %c0_4 = arith.constant 0 : index
    %c0_5 = arith.constant 0 : index
    %3 = vector.load %arg3[%c0_4, %c0_5] : memref<4x8xf32, #tpu.memory_space<vmem>>, vector<4x8xf32>
    %cst = arith.constant dense<0.000000e+00> : vector<128x8xf32>
    %4 = tpu.matmul %2, %3, %cst {dimension_numbers = #tpu.dot_dimension_numbers<[1], [0], [0], [1], [0, 0, 1, 1], [], []>} : vector<128x4xf32>, vector<4x8xf32>, vector<128x8xf32> -> vector<128x8xf32>
    %c0_6 = arith.constant 0 : index
    %c0_7 = arith.constant 0 : index
    %5 = vector.load %arg4[%c0_6, %c0_7] : memref<1x8xf32, #tpu.memory_space<vmem>>, vector<1x8xf32>
    %6 = vector.shape_cast %5 : vector<1x8xf32> to vector<8xf32>
    %7 = vector.shape_cast %6 : vector<8xf32> to vector<1x8xf32>
    %8 = vector.broadcast %7 : vector<1x8xf32> to vector<128x8xf32>
    %9 = arith.addf %4, %8 : vector<128x8xf32>
    %10 = vector.shape_cast %9 : vector<128x8xf32> to vector<2x8x8x8xf32>
    %11 = vector.extract_strided_slice %10 {offsets = [0, 0, 0, 0], sizes = [1, 8, 8, 4], strides = [1, 1, 1, 1]} : vector<2x8x8x8xf32> to vector<1x8x8x4xf32>
    %12 = vector.shape_cast %11 : vector<1x8x8x4xf32> to vector<8x8x4xf32>
    %13 = vector.extract_strided_slice %10 {offsets = [0, 0, 0, 4], sizes = [1, 8, 8, 4], strides = [1, 1, 1, 1]} : vector<2x8x8x8xf32> to vector<1x8x8x4xf32>
    %14 = vector.shape_cast %13 : vector<1x8x8x4xf32> to vector<8x8x4xf32>
    %15 = vector.extract_strided_slice %10 {offsets = [1, 0, 0, 0], sizes = [1, 8, 8, 4], strides = [1, 1, 1, 1]} : vector<2x8x8x8xf32> to vector<1x8x8x4xf32>
    %16 = vector.shape_cast %15 : vector<1x8x8x4xf32> to vector<8x8x4xf32>
    %17 = vector.extract_strided_slice %10 {offsets = [1, 0, 0, 4], sizes = [1, 8, 8, 4], strides = [1, 1, 1, 1]} : vector<2x8x8x8xf32> to vector<1x8x8x4xf32>
    %18 = vector.shape_cast %17 : vector<1x8x8x4xf32> to vector<8x8x4xf32>
    "tpu.trace_start"() <{level = 10 : i32, message = "hwc,hvc->hwv"}> : () -> ()
    %cst_8 = arith.constant dense<0.000000e+00> : vector<8x8x8xf32>
    %19 = tpu.matmul %12, %18, %cst_8 {dimension_numbers = #tpu.dot_dimension_numbers<[2], [2], [1], [1], [0, 0, 0, 1, 1, 1], [0], [0]>} : vector<8x8x4xf32>, vector<8x8x4xf32>, vector<8x8x8xf32> -> vector<8x8x8xf32>
    "tpu.trace_stop"() : () -> ()
    %cst_9 = arith.constant 2.500000e-01 : f32
    %20 = vector.broadcast %cst_9 : f32 to vector<8x8x8xf32>
    %21 = arith.mulf %19, %20 : vector<8x8x8xf32>
    %c0_10 = arith.constant 0 : index
    %c0_11 = arith.constant 0 : index
    %c0_12 = arith.constant 0 : index
    %c0_13 = arith.constant 0 : index
    %22 = vector.load %arg5[%c0_10, %c0_11, %c0_12, %c0_13] : memref<1x8x8x8xf32, #tpu.memory_space<vmem>>, vector<1x8x8x8xf32>
    %23 = vector.shape_cast %22 : vector<1x8x8x8xf32> to vector<8x8x8xf32>
    %24 = arith.addf %21, %23 : vector<8x8x8xf32>
    %c0_14 = arith.constant 0 : index
    %c0_15 = arith.constant 0 : index
    %c0_16 = arith.constant 0 : index
    %c0_17 = arith.constant 0 : index
    %25 = vector.load %arg8[%c0_14, %c0_15, %c0_16, %c0_17] : memref<1x8x8x8xf32, #tpu.memory_space<vmem>>, vector<1x8x8x8xf32>
    %26 = vector.shape_cast %25 : vector<1x8x8x8xf32> to vector<8x8x8xf32>
    %27 = vector.shape_cast %24 : vector<8x8x8xf32> to vector<1x8x8x8xf32>
    tpu.vector_store %arg8[%c0_14, %c0_15, %c0_16, %c0_17], %27 {strides = array<i32>} : memref<1x8x8x8xf32, #tpu.memory_space<vmem>>, vector<1x8x8x8xf32>,
    "tpu.trace_start"() <{level = 10 : i32, message = "hwc,hvc->hwv"}> : () -> ()
    %cst_18 = arith.constant dense<0.000000e+00> : vector<8x8x8xf32>
    %28 = tpu.matmul %16, %14, %cst_18 {dimension_numbers = #tpu.dot_dimension_numbers<[2], [2], [1], [1], [0, 0, 0, 1, 1, 1], [0], [0]>} : vector<8x8x4xf32>, vector<8x8x4xf32>, vector<8x8x8xf32> -> vector<8x8x8xf32>
    "tpu.trace_stop"() : () -> ()
    %cst_19 = arith.constant 2.500000e-01 : f32
    %29 = vector.broadcast %cst_19 : f32 to vector<8x8x8xf32>
    %30 = arith.mulf %28, %29 : vector<8x8x8xf32>
    %c0_20 = arith.constant 0 : index
    %c0_21 = arith.constant 0 : index
    %c0_22 = arith.constant 0 : index
    %c0_23 = arith.constant 0 : index
    %31 = vector.load %arg6[%c0_20, %c0_21, %c0_22, %c0_23] : memref<1x8x8x8xf32, #tpu.memory_space<vmem>>, vector<1x8x8x8xf32>
    %32 = vector.shape_cast %31 : vector<1x8x8x8xf32> to vector<8x8x8xf32>
    %33 = arith.addf %30, %32 : vector<8x8x8xf32>
    %c0_24 = arith.constant 0 : index
    %c0_25 = arith.constant 0 : index
    %c0_26 = arith.constant 0 : index
    %c0_27 = arith.constant 0 : index
    %34 = vector.load %arg9[%c0_24, %c0_25, %c0_26, %c0_27] : memref<1x8x8x8xf32, #tpu.memory_space<vmem>>, vector<1x8x8x8xf32>
    %35 = vector.shape_cast %34 : vector<1x8x8x8xf32> to vector<8x8x8xf32>
    %36 = vector.shape_cast %33 : vector<8x8x8xf32> to vector<1x8x8x8xf32>
    tpu.vector_store %arg9[%c0_24, %c0_25, %c0_26, %c0_27], %36 {strides = array<i32>} : memref<1x8x8x8xf32, #tpu.memory_space<vmem>>, vector<1x8x8x8xf32>,
    %c0_28 = arith.constant 0 : index
    %c0_29 = arith.constant 0 : index
    %c0_30 = arith.constant 0 : index
    %c0_31 = arith.constant 0 : index
    %c0_32 = arith.constant 0 : index
    %37 = vector.load %arg1[%c0_28, %c0_29, %c0_30, %c0_31, %c0_32] : memref<2x1x8x8x4xf32, #tpu.memory_space<vmem>>, vector<2x1x8x8x4xf32>
    %38 = vector.shape_cast %37 : vector<2x1x8x8x4xf32> to vector<2x8x8x4xf32>
    %39 = arith.addf %38, %1 : vector<2x8x8x4xf32>
    %c0_33 = arith.constant 0 : index
    %c0_34 = arith.constant 0 : index
    %c0_35 = arith.constant 0 : index
    %c0_36 = arith.constant 0 : index
    %c0_37 = arith.constant 0 : index
    %40 = vector.load %arg7[%c0_33, %c0_34, %c0_35, %c0_36, %c0_37] : memref<2x1x8x8x4xf32, #tpu.memory_space<vmem>>, vector<2x1x8x8x4xf32>
    %41 = vector.shape_cast %40 : vector<2x1x8x8x4xf32> to vector<2x8x8x4xf32>
    %42 = vector.shape_cast %39 : vector<2x8x8x4xf32> to vector<2x1x8x8x4xf32>
    tpu.vector_store %arg7[%c0_33, %c0_34, %c0_35, %c0_36, %c0_37], %42 {strides = array<i32>} : memref<2x1x8x8x4xf32, #tpu.memory_space<vmem>>, vector<2x1x8x8x4xf32>,
    return
  }
  func.func @transform_0(%arg0: i32) -> (i32, i32, i32, i32, i32) {
    %c0_i32 = arith.constant 0 : i32
    %c0_i32_0 = arith.constant 0 : i32
    %c0_i32_1 = arith.constant 0 : i32
    %c0_i32_2 = arith.constant 0 : i32
    %c0_i32_3 = arith.constant 0 : i32
    return %c0_i32, %arg0, %c0_i32_0, %c0_i32_1, %c0_i32_2 : i32, i32, i32, i32, i32
  }
  func.func @transform_1(%arg0: i32) -> (i32, i32, i32, i32, i32) {
    %c0_i32 = arith.constant 0 : i32
    %c0_i32_0 = arith.constant 0 : i32
    %c0_i32_1 = arith.constant 0 : i32
    %c0_i32_2 = arith.constant 0 : i32
    %c0_i32_3 = arith.constant 0 : i32
    return %c0_i32, %arg0, %c0_i32_0, %c0_i32_1, %c0_i32_2 : i32, i32, i32, i32, i32
  }
  func.func @transform_2(%arg0: i32) -> (i32, i32) {
    %c0_i32 = arith.constant 0 : i32
    %c0_i32_0 = arith.constant 0 : i32
    %c0_i32_1 = arith.constant 0 : i32
    return %c0_i32, %c0_i32_0 : i32, i32
  }
  func.func @transform_3(%arg0: i32) -> (i32, i32) {
    %c0_i32 = arith.constant 0 : i32
    %c0_i32_0 = arith.constant 0 : i32
    %c0_i32_1 = arith.constant 0 : i32
    return %c0_i32, %c0_i32_0 : i32, i32
  }
  func.func @transform_4(%arg0: i32) -> (i32, i32, i32, i32) {
    %c0_i32 = arith.constant 0 : i32
    %c0_i32_0 = arith.constant 0 : i32
    %c0_i32_1 = arith.constant 0 : i32
    %c0_i32_2 = arith.constant 0 : i32
    return %arg0, %c0_i32, %c0_i32_0, %c0_i32_1 : i32, i32, i32, i32
  }
  func.func @transform_5(%arg0: i32) -> (i32, i32, i32, i32) {
    %c0_i32 = arith.constant 0 : i32
    %c0_i32_0 = arith.constant 0 : i32
    %c0_i32_1 = arith.constant 0 : i32
    %c0_i32_2 = arith.constant 0 : i32
    return %arg0, %c0_i32, %c0_i32_0, %c0_i32_1 : i32, i32, i32, i32
  }
  func.func @transform_6(%arg0: i32) -> (i32, i32, i32, i32, i32) {
    %c0_i32 = arith.constant 0 : i32
    %c0_i32_0 = arith.constant 0 : i32
    %c0_i32_1 = arith.constant 0 : i32
    %c0_i32_2 = arith.constant 0 : i32
    %c0_i32_3 = arith.constant 0 : i32
    return %c0_i32, %arg0, %c0_i32_0, %c0_i32_1, %c0_i32_2 : i32, i32, i32, i32, i32
  }
  func.func @transform_7(%arg0: i32) -> (i32, i32, i32, i32) {
    %c0_i32 = arith.constant 0 : i32
    %c0_i32_0 = arith.constant 0 : i32
    %c0_i32_1 = arith.constant 0 : i32
    %c0_i32_2 = arith.constant 0 : i32
    return %arg0, %c0_i32, %c0_i32_0, %c0_i32_1 : i32, i32, i32, i32
  }
  func.func @transform_8(%arg0: i32) -> (i32, i32, i32, i32) {
    %c0_i32 = arith.constant 0 : i32
    %c0_i32_0 = arith.constant 0 : i32
    %c0_i32_1 = arith.constant 0 : i32
    %c0_i32_2 = arith.constant 0 : i32
    return %arg0, %c0_i32, %c0_i32_0, %c0_i32_1 : i32, i32, i32, i32
  }
}

</mosaic_0001>

<bundles_post_ra>
// kernel: pam_forward.4
= control target key start
LH: loop header
LB: loop body
LE: loop exit
PB: predicated region body
PF: predicated region fallthrough
CT: control target
= control target key end

     0   :  { %s2059_s24 = smov 0   ;;  %s2061_s25 = smov 0   ;;  %s2640_s0 = inlined_call_operand.vmem [shape: f32[2,2,8,8,4], index: 0, kind: input, shape index: {}]   ;;  %s2641_s1 = inlined_call_operand.vmem [shape: f32[36,4], index: 1, kind: input, shape index: {}]   ;;  %s2642_s2 = inlined_call_operand.vmem [shape: f32[1,4], index: 2, kind: input, shape index: {}]   ;;  %s2643_s3 = inlined_call_operand.vmem [shape: f32[36,4], index: 3, kind: input, shape index: {}]   ;;  %s2644_s4 = inlined_call_operand.vmem [shape: f32[1,4], index: 4, kind: input, shape index: {}]   ;;  %s2645_s5 = inlined_call_operand.vmem [shape: f32[4,4], index: 5, kind: input, shape index: {}]   ;;  %s2646_s6 = inlined_call_operand.vmem [shape: f32[1,4], index: 6, kind: input, shape index: {}]   ;;  %s2647_s7 = inlined_call_operand.vmem [shape: f32[2,2,8,8,4], index: 7, kind: output, shape index: {}]  }
   0x1   :  { %s2063_s26 = smov 0   ;;  %s2065_s27 = smov 0  }
   0x2   :  { %s2067_s28 = smov 0  }
   0x3 LB: > { %s26_s29 = sadd.s32 1, %s2000_s26  ;;  %s29_s30 = sadd.s32 1, %s2004_s27  ;;  %s2008_s28 = sphi %s2067_s28, %s17_s28   ;;  %s2004_s27 = sphi %s2065_s27, %s2651_s27   ;;  %s2000_s26 = sphi %s2063_s26, %s2650_s26   ;;  %s1996_s25 = sphi %s2061_s25, %s2649_s25   ;;  %s1992_s24 = sphi %s2059_s24, %s2648_s24  }
   0x4   : > { %p27_p0 = scmp.ge.s32.totalorder %s26_s29, 2  ;;  %p1747_p1 = scmp.ge.s32.totalorder %s2008_s28, 1 }
   0x5   : > { %p257_p2 = scmp.lt.s32.totalorder %s2008_s28, 5 }
   0x6   : > { %s2653_s29 = smov (%p27_p0, %s26_s29), 0  ;;  %s2655_s30 = smov (!%p27_p0, %s29_s30), %s2004_s27 }
   0x7   : > { %p258_p3 = pnand %p1747_p1, %p257_p2  ;;  %p31_p4 = scmp.ge.s32.totalorder %s2655_s30, 2 }
   0x8   : > { %vm323_vm0 = vcmask (!%p258_p3), 31744   ;;  %vm325_vm1 = vcmask (!%p258_p3), 25600   ;;  %v2010_v0 = vmov (!%p258_p3), 0.0   ;;  %p297_p5 = scmp.lt.s32.totalorder (!%p258_p3), %s1996_s25, 1  ;;  %p299_p6 = scmp.lt.s32.totalorder (!%p258_p3), %s1992_s24, 1  ;;  %v754_v18 = vld [vmem:[%s2641_s1] sm:$0xff] (!%p258_p3) }
   0x9   : > { %s2657_s30 = smov (%p31_p4, %s2655_s30), 0  ;;  %261 = sbr.rel (%p258_p3) target bundleno = 884 (0x374), region = 48 }
   0xa   : > { %324 = vst.msk [vmem:[#allocation2] sm:$0xff] (!%p258_p3), %vm323_vm0, %v2010_v0  ;;  %327 = vst.msk [vmem:[#allocation2 + $0x10] sm:$0xff] (!%p258_p3), %vm323_vm0, %v2010_v0  ;;  %s2011_s12 = smov (!%p258_p3), 4   ;;  %s2012_s13 = smov (!%p258_p3), 8   ;;  %v755_v19 = vld [vmem:[%s2641_s1 + $0x8] sm:$0xff] (!%p258_p3)  ;;  %v756_v23 = vld [vmem:[%s2641_s1 + $0x10] sm:$0xff] (!%p258_p3) }
   0xb   : > { %326 = vst.msk [vmem:[#allocation2 + $0x8] sm:$0x3] (!%p258_p3), %vm325_vm1, %v2010_v0  ;;  %328 = vst.msk [vmem:[#allocation2 + $0x18] sm:$0x3] (!%p258_p3), %vm325_vm1, %v2010_v0  ;;  %s2013_s17 = smov (!%p258_p3), 12   ;;  %s2014_s18 = smov (!%p258_p3), 16   ;;  %v1879_v20 = vpack.c.bf16 (!%p258_p3), %v755_v19, %v754_v18 }
   0xc   : > { %329 = vst.msk [vmem:[#allocation2 + $0x20] sm:$0xff] (!%p258_p3), %vm323_vm0, %v2010_v0  ;;  %331 = vst.msk [vmem:[#allocation2 + $0x30] sm:$0xff] (!%p258_p3), %vm323_vm0, %v2010_v0  ;;  %s2015_s19 = smov (!%p258_p3), 20   ;;  %v757_v24 = vld [vmem:[%s2641_s1 + $0x18] sm:$0xff] (!%p258_p3)  ;;  %v758_v26 = vld [vmem:[%s2641_s1 + $0x20] sm:$0xf] (!%p258_p3) }
   0xd   : > { %330 = vst.msk [vmem:[#allocation2 + $0x28] sm:$0x3] (!%p258_p3), %vm325_vm1, %v2010_v0  ;;  %332 = vst.msk [vmem:[#allocation2 + $0x38] sm:$0x3] (!%p258_p3), %vm325_vm1, %v2010_v0  ;;  %1880 = vmatprep.subr.bf16.mxu0 (!%p258_p3), %v1879_v20  ;;  %v1883_v25 = vpack.c.bf16 (!%p258_p3), %v757_v24, %v756_v23  ;;  %vm791_vm2 = vcmask (!%p258_p3), 1043456   ;;  %s2017_s20 = smov (!%p258_p3), 28  }
   0xe   : > { %333 = vst.msk [vmem:[#allocation2 + $0x40] sm:$0xff] (!%p258_p3), %vm323_vm0, %v2010_v0  ;;  %335 = vst.msk [vmem:[#allocation2 + $0x50] sm:$0xff] (!%p258_p3), %vm323_vm0, %v2010_v0  ;;  %1882 = vmatpush3.bf16.msra.mxu0 (!%p258_p3), %v1879_v20  ;;  %s2018_s21 = smov (!%p258_p3), 32   ;;  %vm691_vm3 = vcmask (!%p258_p3), 64512   ;;  %vm700_vm4 = vcmask (!%p258_p3), 97280   ;;  %vm709_vm5 = vcmask (!%p258_p3), 130048  }
   0xf   : > { %334 = vst.msk [vmem:[#allocation2 + $0x48] sm:$0x3] (!%p258_p3), %vm325_vm1, %v2010_v0  ;;  %336 = vst.msk [vmem:[#allocation2 + $0x58] sm:$0x3] (!%p258_p3), %vm325_vm1, %v2010_v0  ;;  %1884 = vmatprep.subr.bf16.mxu0 (!%p258_p3), %v1883_v25  ;;  %vm718_vm6 = vcmask (!%p258_p3), 162816   ;;  %vm727_vm7 = vcmask (!%p258_p3), 195584  }
  0x10   : > { %337 = vst.msk [vmem:[#allocation2 + $0x60] sm:$0xff] %vm323_vm0, %v2010_v0  ;;  %339 = vst.msk [vmem:[#allocation2 + $0x70] sm:$0xff] %vm323_vm0, %v2010_v0  ;;  %s2659_s25 = smov (!%p297_p5, %s1996_s25), 1  ;;  %s2661_s24 = smov (!%p299_p6, %s1992_s24), 1  ;;  %vm736_vm8 = vcmask 228352   ;;  %vm745_vm9 = vcmask 261120  }
  0x11   : > { %338 = vst.msk [vmem:[#allocation2 + $0x68] sm:$0x3] %vm325_vm1, %v2010_v0  ;;  %340 = vst.msk [vmem:[#allocation2 + $0x78] sm:$0x3] %vm325_vm1, %v2010_v0  ;;  %s1749_s8 = sshll.u32 %s2659_s25, 4  ;;  %s1748_s9 = sshll.u32 %s2661_s24, 3 }
  0x12   : > { %341 = vst.msk [vmem:[#allocation2 + $0x80] sm:$0xff] %vm323_vm0, %v2010_v0  ;;  %343 = vst.msk [vmem:[#allocation2 + $0x90] sm:$0xff] %vm323_vm0, %v2010_v0  ;;  %s2117_s10 = sadd.s32 %s1749_s8, %s1748_s9  ;;  %v2119_v1 = vld [vmem:[#allocation2 + $0x1] sm:$0xff]  ;;  %s2016_s24 = smov 24   ;;  %1886 = vmatpush3.bf16.msra.mxu0 %v1883_v25  ;;  %vm766_vm10 = vcmask 293888  }
  0x13   : > { %342 = vst.msk [vmem:[#allocation2 + $0x88] sm:$0x3] %vm325_vm1, %v2010_v0  ;;  %344 = vst.msk [vmem:[#allocation2 + $0x98] sm:$0x3] %vm325_vm1, %v2010_v0  ;;  %v2121_v2 = vld [vmem:[#allocation2 + $0x2] sm:$0xff]  ;;  %s1750_s11 = sshll.u32 %s2117_s10, 3  ;;  %435 = vrot.lane.b32.xlu0 %v2119_v1, %s2011_s12  ;;  %1829 = vmatprep.subr.msk.mxu0 %vm791_vm2, %v758_v26 }
  0x14   : > { %467 = vrot.lane.b32.xlu1 %v2121_v2, %s2012_s13  ;;  %s305_s16 = scalar_lea.vmem %s2640_s0, %s1750_s11  ;;  %v2280_v61 = vld [vmem:[#allocation2] sm:$0xff] }
  0x15   : > { %v2133_v3 = vld [vmem:[%s305_s16] sm:$0xff]  ;;  %v2135_v4 = vld [vmem:[%s305_s16 + $0x8] sm:$0xff]  ;;  %v317_v5 = vld [vmem:[%s305_s16 + $0x10] sm:$0xff] }
  0x16   : > { %346 = vst.msk [vmem:[#allocation2 + $0x11] sm:$0xff] %vm323_vm0, %v2133_v3  ;;  %347 = vst.msk [vmem:[#allocation2 + $0x21] sm:$0xff] %vm323_vm0, %v2135_v4  ;;  %v2142_v6 = vld [vmem:[%s305_s16 + $0x18] sm:$0xff]  ;;  %v2144_v7 = vld [vmem:[%s305_s16 + $0x20] sm:$0xff]  ;;  %1848 = vmatprep.mubr.msk.f32.mxu1 %vm323_vm0, %v317_v5  ;;  %1830 = vmatpush3.msk.msra.mxu0 %vm791_vm2, %v758_v26 }
  0x17   : > { %348 = vst.msk [vmem:[#allocation2 + $0x31] sm:$0xff] %vm323_vm0, %v317_v5  ;;  %v2146_v8 = vld [vmem:[%s305_s16 + $0x28] sm:$0xff]  ;;  %349 = vst.msk [vmem:[#allocation2 + $0x41] sm:$0xff] %vm323_vm0, %v2142_v6  ;;  %v2155_v9 = vld [vmem:[%s305_s16 + $0x30] sm:$0xff] }
  0x18   : > { %350 = vst.msk [vmem:[#allocation2 + $0x51] sm:$0xff] %vm323_vm0, %v2144_v7  ;;  %351 = vst.msk [vmem:[#allocation2 + $0x61] sm:$0xff] %vm323_vm0, %v2146_v8  ;;  %v2157_v10 = vld [vmem:[%s305_s16 + $0x38] sm:$0xff] }
  0x19   : > { %352 = vst.msk [vmem:[#allocation2 + $0x71] sm:$0xff] %vm323_vm0, %v2155_v9  ;;  %353 = vst.msk [vmem:[#allocation2 + $0x81] sm:$0xff] %vm323_vm0, %v2157_v10  ;;  %v410_v44 = vld [vmem:[#allocation2 + $0x90] sm:$0xff] }
  0x1a   : > { %v418_v45 = vld [vmem:[#allocation2 + $0x91] sm:$0xff] }
  0x1b   : > { %v2267_v48 = vld [vmem:[#allocation2 + $0x92] sm:$0xff] }
  0x1d   : > { %v371_v11 = vld [vmem:[#allocation2 + $0x12] sm:$0xff]  ;;  %v2165_v13 = vld [vmem:[#allocation2 + $0x20] sm:$0xff] }
  0x1e   : > { %v363_v12 = vld [vmem:[#allocation2 + $0x11] sm:$0xff]  ;;  %469 = vrot.lane.b32.xlu1 %v371_v11, %s2012_s13  ;;  %v364_v15 = vld [vmem:[#allocation2 + $0x21] sm:$0xff] }
  0x1f   : > { %437 = vrot.lane.b32.xlu0 %v363_v12, %s2011_s12  ;;  %v2167_v14 = vld [vmem:[#allocation2 + $0x10] sm:$0xff]  ;;  %v372_v16 = vld [vmem:[#allocation2 + $0x22] sm:$0xff] }
  0x20   : > { %v365_v17 = vld [vmem:[#allocation2 + $0x31] sm:$0xff]  ;;  %v2205_v27 = vld [vmem:[#allocation2 + $0x40] sm:$0xff] }
  0x21   : > { %v2188_v21 = vld [vmem:[#allocation2 + $0x30] sm:$0xff]  ;;  %v389_v28 = vld [vmem:[#allocation2 + $0x41] sm:$0xff] }
  0x22   : > { %501 = vrot.lane.b32.xlu1 %v2165_v13, %s2013_s17  ;;  %v373_v22 = vld [vmem:[#allocation2 + $0x32] sm:$0xff]  ;;  %v374_v29 = vld [vmem:[#allocation2 + $0x42] sm:$0xff] }
  0x23   : > { %499 = vrot.lane.b32.xlu0 %v2167_v14, %s2013_s17  ;;  %v367_v30 = vld [vmem:[#allocation2 + $0x51] sm:$0xff]  ;;  %v2231_v33 = vld [vmem:[#allocation2 + $0x60] sm:$0xff] }
  0x24   : > { %v2223_v31 = vld [vmem:[#allocation2 + $0x50] sm:$0xff]  ;;  %v391_v34 = vld [vmem:[#allocation2 + $0x61] sm:$0xff] }
  0x25   : > { %v375_v32 = vld [vmem:[#allocation2 + $0x52] sm:$0xff]  ;;  %v376_v35 = vld [vmem:[#allocation2 + $0x62] sm:$0xff] }
  0x26   : > { %439 = vrot.lane.b32.xlu1 %v364_v15, %s2011_s12  ;;  %v369_v36 = vld [vmem:[#allocation2 + $0x71] sm:$0xff]  ;;  %v385_v39 = vld [vmem:[#allocation2 + $0x80] sm:$0xff] }
  0x27   : > { %531 = vrot.lane.b32.xlu0 %v363_v12, %s2014_s18  ;;  %v2247_v37 = vld [vmem:[#allocation2 + $0x70] sm:$0xff]  ;;  %v393_v40 = vld [vmem:[#allocation2 + $0x81] sm:$0xff] }
  0x28   : > { %v377_v38 = vld [vmem:[#allocation2 + $0x72] sm:$0xff]  ;;  %v401_v41 = vld [vmem:[#allocation2 + $0x82] sm:$0xff] }
  0x2a   : > { %563 = vrot.lane.b32.xlu1 %v371_v11, %s2015_s19 }
  0x2b   : > { %533 = vrot.lane.b32.xlu0 %v364_v15, %s2014_s18 }
  0x2e   : > { %471 = vrot.lane.b32.xlu1 %v372_v16, %s2012_s13 }
  0x2f   : > { %441 = vrot.lane.b32.xlu0 %v365_v17, %s2011_s12 }
  0x32   : > { %595 = vrot.lane.b32.xlu1 %v2165_v13, %s2016_s24 }
  0x33   : > { %565 = vrot.lane.b32.xlu0 %v372_v16, %s2015_s19 }
  0x36   : > { %503 = vrot.lane.b32.xlu1 %v2188_v21, %s2013_s17 }
  0x37   : > { %473 = vrot.lane.b32.xlu0 %v373_v22, %s2012_s13 }
  0x3a   : > { %627 = vrot.lane.b32.xlu1 %v364_v15, %s2017_s20 }
  0x3b   : > { %597 = vrot.lane.b32.xlu0 %v2188_v21, %s2016_s24 }
  0x3e   : > { %535 = vrot.lane.b32.xlu1 %v365_v17, %s2014_s18 }
  0x3f   : > { %505 = vrot.lane.b32.xlu0 %v2205_v27, %s2013_s17 }
  0x42   : > { %659 = vrot.lane.b32.xlu1 %v372_v16, %s2018_s21 }
  0x43   : > { %629 = vrot.lane.b32.xlu0 %v365_v17, %s2017_s20 }
  0x46   : > { %537 = vrot.lane.b32.xlu1 %v389_v28, %s2014_s18 }
  0x47   : > { %443 = vrot.lane.b32.xlu0 %v389_v28, %s2011_s12 }
  0x4a   : > { %661 = vrot.lane.b32.xlu1 %v373_v22, %s2018_s21 }
  0x4b   : > { %567 = vrot.lane.b32.xlu0 %v373_v22, %s2015_s19 }
  0x4e   : > { %475 = vrot.lane.b32.xlu1 %v374_v29, %s2012_s13 }
  0x4f   : > { %445 = vrot.lane.b32.xlu0 %v367_v30, %s2011_s12 }
  0x52   : > { %599 = vrot.lane.b32.xlu1 %v2205_v27, %s2016_s24 }
  0x53   : > { %569 = vrot.lane.b32.xlu0 %v374_v29, %s2015_s19 }
  0x56   : > { %507 = vrot.lane.b32.xlu1 %v2223_v31, %s2013_s17 }
  0x57   : > { %477 = vrot.lane.b32.xlu0 %v375_v32, %s2012_s13 }
  0x5a   : > { %631 = vrot.lane.b32.xlu1 %v389_v28, %s2017_s20 }
  0x5b   : > { %601 = vrot.lane.b32.xlu0 %v2223_v31, %s2016_s24 }
  0x5e   : > { %539 = vrot.lane.b32.xlu1 %v367_v30, %s2014_s18 }
  0x5f   : > { %509 = vrot.lane.b32.xlu0 %v2231_v33, %s2013_s17 }
  0x62   : > { %663 = vrot.lane.b32.xlu1 %v374_v29, %s2018_s21 }
  0x63   : > { %633 = vrot.lane.b32.xlu0 %v367_v30, %s2017_s20 }
  0x66   : > { %541 = vrot.lane.b32.xlu1 %v391_v34, %s2014_s18 }
  0x67   : > { %447 = vrot.lane.b32.xlu0 %v391_v34, %s2011_s12 }
  0x6a   : > { %665 = vrot.lane.b32.xlu1 %v375_v32, %s2018_s21 }
  0x6b   : > { %571 = vrot.lane.b32.xlu0 %v375_v32, %s2015_s19 }
  0x6e   : > { %479 = vrot.lane.b32.xlu1 %v376_v35, %s2012_s13 }
  0x6f   : > { %449 = vrot.lane.b32.xlu0 %v369_v36, %s2011_s12 }
  0x72   : > { %603 = vrot.lane.b32.xlu1 %v2231_v33, %s2016_s24 }
  0x73   : > { %573 = vrot.lane.b32.xlu0 %v376_v35, %s2015_s19 }
  0x76   : > { %511 = vrot.lane.b32.xlu1 %v2247_v37, %s2013_s17 }
  0x77   : > { %481 = vrot.lane.b32.xlu0 %v377_v38, %s2012_s13 }
  0x7a   : > { %635 = vrot.lane.b32.xlu1 %v391_v34, %s2017_s20 }
  0x7b   : > { %605 = vrot.lane.b32.xlu0 %v2247_v37, %s2016_s24 }
  0x7e   : > { %543 = vrot.lane.b32.xlu1 %v369_v36, %s2014_s18 }
  0x7f   : > { %513 = vrot.lane.b32.xlu0 %v385_v39, %s2013_s17 }
  0x82   : > { %667 = vrot.lane.b32.xlu1 %v376_v35, %s2018_s21 }
  0x83   : > { %637 = vrot.lane.b32.xlu0 %v369_v36, %s2017_s20 }
  0x85   : > { %v436_v42 = vpop.permute.xlu0 %435 }
  0x86   : > { %575 = vrot.lane.b32.xlu1 %v377_v38, %s2015_s19  ;;  %v468_v43 = vpop.permute.xlu1 %467  ;;  %v683_v62 = vsel %vm323_vm0, %v2280_v61, %v436_v42 }
  0x87   : > { %545 = vrot.lane.b32.xlu0 %v393_v40, %s2014_s18 }
  0x8a   : > { %577 = vrot.lane.b32.xlu1 %v401_v41, %s2015_s19 }
  0x8b   : > { %669 = vrot.lane.b32.xlu0 %v377_v38, %s2018_s21 }
  0x8e   : > { %609 = vrot.lane.b32.xlu1 %v410_v44, %s2016_s24 }
  0x8f   : > { %607 = vrot.lane.b32.xlu0 %v385_v39, %s2016_s24 }
  0x90   : > { %v470_v46 = vpop.permute.xlu1 %469 }
  0x91   : > { %v438_v47 = vpop.permute.xlu0 %437 }
  0x92   : > { %641 = vrot.lane.b32.xlu1 %v418_v45, %s2017_s20  ;;  %v684_v17 = vsel %vm323_vm0, %v2167_v14, %v438_v47 }
  0x93   : > { %639 = vrot.lane.b32.xlu0 %v393_v40, %s2017_s20  ;;  %v693_v23 = vsel %vm691_vm3, %v684_v17, %v470_v46 }
  0x94   : > { %v502_v49 = vpop.permute.xlu1 %501 }
  0x95   : > { %v500_v50 = vpop.permute.xlu0 %499  ;;  %v702_v24 = vsel %vm700_vm4, %v693_v23, %v502_v49 }
  0x96   : > { %673 = vrot.lane.b32.xlu1 %v2267_v48, %s2018_s21 }
  0x97   : > { %671 = vrot.lane.b32.xlu0 %v401_v41, %s2018_s21 }
  0x98   : > { %v440_v51 = vpop.permute.xlu1 %439 }
  0x99   : > { %v532_v52 = vpop.permute.xlu0 %531 }
  0x9a   : > { %1326 = vrot.lane.b32.xlu1 %v410_v44, %s2016_s24 }
  0x9b   : > { %1152 = vrot.lane.b32.xlu0 %v2119_v1, %s2011_s12  ;;  %v692_v1 = vsel %vm691_vm3, %v683_v62, %v468_v43 }
  0x9c   : > { %v564_v53 = vpop.permute.xlu1 %563 }
  0x9d   : > { %v534_v54 = vpop.permute.xlu0 %533 }
  0x9e   : > { %1358 = vrot.lane.b32.xlu1 %v418_v45, %s2017_s20  ;;  %v711_v28 = vsel %vm709_vm5, %v702_v24, %v534_v54  ;;  %v685_v45 = vsel %vm323_vm0, %v2165_v13, %v440_v51 }
  0x9f   : > { %1184 = vrot.lane.b32.xlu0 %v2121_v2, %s2012_s13  ;;  %v701_v2 = vsel %vm700_vm4, %v692_v1, %v500_v50 }
  0xa0   : > { %v472_v55 = vpop.permute.xlu1 %471  ;;  %v710_v12 = vsel %vm709_vm5, %v701_v2, %v532_v52 }
  0xa1   : > { %v2278_v56 = vpop.permute.xlu0 %441  ;;  %v719_v15 = vsel %vm718_vm6, %v710_v12, %v564_v53  ;;  %v694_v46 = vsel %vm691_vm3, %v685_v45, %v472_v55 }
  0xa2   : > { %v686_v13 = vsel %vm323_vm0, %v2188_v21, %v2278_v56 }
  0xa4   : > { %v596_v57 = vpop.permute.xlu1 %595 }
  0xa5   : > { %v566_v58 = vpop.permute.xlu0 %565  ;;  %v728_v16 = vsel %vm727_vm7, %v719_v15, %v596_v57 }
  0xa6   : > { %v720_v29 = vsel %vm718_vm6, %v711_v28, %v566_v58 }
  0xa8   : > { %v504_v59 = vpop.permute.xlu1 %503 }
  0xa9   : > { %v474_v60 = vpop.permute.xlu0 %473  ;;  %v703_v47 = vsel %vm700_vm4, %v694_v46, %v504_v59 }
  0xaa   : > { %v695_v51 = vsel %vm691_vm3, %v686_v13, %v474_v60 }
  0xac   : > { %v628_v63 = vpop.permute.xlu1 %627 }
  0xad   : > { %v598_v0 = vpop.permute.xlu0 %597  ;;  %v737_v18 = vsel %vm736_vm8, %v728_v16, %v628_v63 }
  0xae   : > { %v729_v14 = vsel %vm727_vm7, %v720_v29, %v598_v0 }
  0xb0   : > { %v536_v5 = vpop.permute.xlu1 %535 }
  0xb1   : > { %v506_v11 = vpop.permute.xlu0 %505  ;;  %v712_v52 = vsel %vm709_vm5, %v703_v47, %v536_v5 }
  0xb2   : > { %v704_v55 = vsel %vm700_vm4, %v695_v51, %v506_v11 }
  0xb4   : > { %v660_v19 = vpop.permute.xlu1 %659 }
  0xb5   : > { %v630_v20 = vpop.permute.xlu0 %629  ;;  %v746_v22 = vsel %vm745_vm9, %v737_v18, %v660_v19 }
  0xb6   : > { %1831 = vmatprep.mubr.msk.f32.mxu0 %vm766_vm10, %v746_v22  ;;  %v738_v30 = vsel %vm736_vm8, %v729_v14, %v630_v20 }
  0xb8   : > { %v538_v25 = vpop.permute.xlu1 %537 }
  0xb9   : > { %v444_v26 = vpop.permute.xlu0 %443  ;;  %v713_v1 = vsel %vm709_vm5, %v704_v55, %v538_v25 }
  0xba   : > { %v687_v23 = vsel %vm323_vm0, %v2205_v27, %v444_v26 }
  0xbc   : > { %v662_v32 = vpop.permute.xlu1 %661 }
  0xbd   : > { %v568_v34 = vpop.permute.xlu0 %567  ;;  %v747_v35 = vsel %vm745_vm9, %v738_v30, %v662_v32 }
  0xbe   : > { %1832 = vmatmul.mubr.msk.f32.vlgmr.msra.gmra.mrb[0].mxu0 %vm766_vm10, %v747_v35  ;;  %v721_v53 = vsel %vm718_vm6, %v712_v52, %v568_v34 }
  0xc0   : > { %v476_v36 = vpop.permute.xlu1 %475 }
  0xc1   : > { %v446_v38 = vpop.permute.xlu0 %445  ;;  %v696_v24 = vsel %vm691_vm3, %v687_v23, %v476_v36 }
  0xc2   : > { %v688_v27 = vsel %vm323_vm0, %v2223_v31, %v446_v38 }
  0xc4   : > { %v600_v39 = vpop.permute.xlu1 %599 }
  0xc5   : > { %v570_v40 = vpop.permute.xlu0 %569  ;;  %v730_v54 = vsel %vm727_vm7, %v721_v53, %v600_v39 }
  0xc6   : > { %v722_v2 = vsel %vm718_vm6, %v713_v1, %v570_v40 }
  0xc8   : > { %v508_v41 = vpop.permute.xlu1 %507 }
  0xc9   : > { %v478_v42 = vpop.permute.xlu0 %477  ;;  %v705_v25 = vsel %vm700_vm4, %v696_v24, %v508_v41 }
  0xca   : > { %v697_v26 = vsel %vm691_vm3, %v688_v27, %v478_v42  ;;  %v1465_v27 = vld [vmem:[%s2643_s3 + $0x8] sm:$0xff] }
  0xcc   : > { %v632_v43 = vpop.permute.xlu1 %631 }
  0xcd   : > { %v602_v44 = vpop.permute.xlu0 %601  ;;  %v739_v57 = vsel %vm736_vm8, %v730_v54, %v632_v43 }
  0xce   : > { %v731_v5 = vsel %vm727_vm7, %v722_v2, %v602_v44 }
  0xd0   : > { %v540_v49 = vpop.permute.xlu1 %539 }
  0xd1   : > { %v510_v50 = vpop.permute.xlu0 %509  ;;  %v714_v14 = vsel %vm709_vm5, %v705_v25, %v540_v49 }
  0xd2   : > { %v706_v36 = vsel %vm700_vm4, %v697_v26, %v510_v50 }
  0xd4   : > { %v664_v58 = vpop.permute.xlu1 %663 }
  0xd5   : > { %v634_v62 = vpop.permute.xlu0 %633  ;;  %v748_v63 = vsel %vm745_vm9, %v739_v57, %v664_v58 }
  0xd6   : > { %1834 = vmatprep.mubr.msk.f32.mxu0 %vm766_vm10, %v748_v63  ;;  %v740_v12 = vsel %vm736_vm8, %v731_v5, %v634_v62 }
  0xd8   : > { %v542_v59 = vpop.permute.xlu1 %541 }
  0xd9   : > { %v448_v0 = vpop.permute.xlu0 %447  ;;  %v715_v44 = vsel %vm709_vm5, %v706_v36, %v542_v59 }
  0xda   : > { %v689_v50 = vsel %vm323_vm0, %v2231_v33, %v448_v0 }
  0xdc   : > { %v666_v15 = vpop.permute.xlu1 %665 }
  0xdd   : > { %v572_v16 = vpop.permute.xlu0 %571  ;;  %v749_v21 = vsel %vm745_vm9, %v740_v12, %v666_v15 }
  0xde   : > { %1835 = vmatmul.mubr.msk.f32.gmra.mrb[2].mxu0 %vm766_vm10, %v749_v21  ;;  %v723_v30 = vsel %vm718_vm6, %v714_v14, %v572_v16  ;;  %v2368_v21 = vld [vmem:[%s2642_s2] ss:$0 sm:$0xff] }
  0xe0   : > { %v480_v56 = vpop.permute.xlu1 %479 }
  0xe1   : > { %v450_v60 = vpop.permute.xlu0 %449  ;;  %v698_v54 = vsel %vm691_vm3, %v689_v50, %v480_v56 }
  0xe2   : > { %v690_v53 = vsel %vm323_vm0, %v2247_v37, %v450_v60 }
  0xe4   : > { %v604_v17 = vpop.permute.xlu1 %603 }
  0xe5   : > { %v574_v11 = vpop.permute.xlu0 %573  ;;  %v732_v32 = vsel %vm727_vm7, %v723_v30, %v604_v17 }
  0xe6   : > { %v724_v45 = vsel %vm718_vm6, %v715_v44, %v574_v11 }
  0xe8   : > { %v512_v18 = vpop.permute.xlu1 %511 }
  0xe9   : > { %v482_v19 = vpop.permute.xlu0 %481  ;;  %v707_v58 = vsel %vm700_vm4, %v698_v54, %v512_v18 }
  0xea   : > { %v699_v57 = vsel %vm691_vm3, %v690_v53, %v482_v19 }
  0xec   : > { %v636_v20 = vpop.permute.xlu1 %635 }
  0xed   : > { %v606_v22 = vpop.permute.xlu0 %605  ;;  %v741_v34 = vsel %vm736_vm8, %v732_v32, %v636_v20 }
  0xee   : > { %v733_v46 = vsel %vm727_vm7, %v724_v45, %v606_v22 }
  0xf0   : > { %v544_v28 = vpop.permute.xlu1 %543 }
  0xf1   : > { %v514_v29 = vpop.permute.xlu0 %513  ;;  %v716_v51 = vsel %vm709_vm5, %v707_v58, %v544_v28 }
  0xf2   : > { %v708_v62 = vsel %vm700_vm4, %v699_v57, %v514_v29  ;;  %v924_v29 = vld [vmem:[%s2645_s5] sm:$0xf] }
  0xf3   : > { %1895 = vmatprep.subr.msk.mxu1 %vm791_vm2, %v924_v29  ;;  %1843 = vmatprep.subr.msk.mxu0 %vm791_vm2, %v924_v29 }
  0xf4   : > { %v668_v35 = vpop.permute.xlu1 %667  ;;  %1896 = vmatpush3.msk.msra.mxu1 %vm791_vm2, %v924_v29  ;;  %1844 = vmatpush3.msk.msra.mxu0 %vm791_vm2, %v924_v29 }
  0xf5   : > { %v638_v39 = vpop.permute.xlu0 %637  ;;  %v750_v40 = vsel %vm745_vm9, %v741_v34, %v668_v35  ;;  %1849 = vmatmul.mubr.msk.f32.vlgmr.msra.gmra.mrb[0].mxu1 %vm323_vm0, %v2142_v6 }
  0xf6   : > { %1837 = vmatprep.mubr.msk.f32.mxu0 %vm766_vm10, %v750_v40  ;;  %v742_v47 = vsel %vm736_vm8, %v733_v46, %v638_v39  ;;  %1851 = vmatprep.mubr.msk.f32.mxu1 %vm323_vm0, %v2144_v7  ;;  %v1464_v40 = vld [vmem:[%s2643_s3] sm:$0xff] }
  0xf7   : > { %v1887_v26 = vpack.c.bf16 %v1465_v27, %v1464_v40  ;;  %v1468_v46 = vld [vmem:[%s2643_s3 + $0x20] sm:$0xf] }
  0xf8   : > { %v576_v41 = vpop.permute.xlu1 %575 }
  0xf9   : > { %v546_v43 = vpop.permute.xlu0 %545  ;;  %v725_v59 = vsel %vm718_vm6, %v716_v51, %v576_v41  ;;  %1852 = vmatmul.mubr.msk.f32.gmra.mrb[2].mxu1 %vm323_vm0, %v2146_v8  ;;  %1888 = vmatprep.subr.bf16.mxu1 %v1887_v26  ;;  %v1466_v41 = vld [vmem:[%s2643_s3 + $0x10] sm:$0xff] }
  0xfa   : > { %v717_v55 = vsel %vm709_vm5, %v708_v62, %v546_v43  ;;  %1854 = vmatprep.mubr.msk.f32.mxu1 %vm323_vm0, %v2155_v9  ;;  %1890 = vmatpush3.bf16.msra.mxu1 %v1887_v26  ;;  %v1467_v43 = vld [vmem:[%s2643_s3 + $0x18] sm:$0xff] }
  0xfb   : > { %v1891_v44 = vpack.c.bf16 %v1467_v43, %v1466_v41 }
  0xfc   : > { %v578_v49 = vpop.permute.xlu1 %577 }
  0xfd   : > { %v670_v52 = vpop.permute.xlu0 %669  ;;  %v726_v33 = vsel %vm718_vm6, %v717_v55, %v578_v49  ;;  %1855 = vmatmul.mubr.msk.f32.gmra.mrb[4].mxu1 %vm323_vm0, %v2157_v10  ;;  %1892 = vmatprep.subr.bf16.mxu1 %v1891_v44 }
  0xfe   : > { %v751_v31 = vsel %vm745_vm9, %v742_v47, %v670_v52  ;;  %1894 = vmatpush3.bf16.msra.mxu1 %v1891_v44 }
  0xff   : > { %1838 = vmatmul.mubr.msk.f32.gmra.mrb[4].mxu0 %vm766_vm10, %v751_v31  ;;  %1865 = vmatprep.subr.msk.mxu1 %vm791_vm2, %v1468_v46 }
 0x100   : > { %v610_v38 = vpop.permute.xlu1 %609 }
 0x101   : > { %v608_v42 = vpop.permute.xlu0 %607  ;;  %v735_v37 = vsel %vm727_vm7, %v726_v33, %v610_v38 }
 0x102   : > { %v734_v0 = vsel %vm727_vm7, %v725_v59, %v608_v42  ;;  %1866 = vmatpush3.msk.msra.mxu1 %vm791_vm2, %v1468_v46 }
 0x104   : > { %v642_v63 = vpop.permute.xlu1 %641 }
 0x105   : > { %v640_v13 = vpop.permute.xlu0 %639  ;;  %v744_v1 = vsel %vm736_vm8, %v735_v37, %v642_v63 }
 0x106   : > { %v743_v2 = vsel %vm736_vm8, %v734_v0, %v640_v13 }
 0x108   : > { %v674_v5 = vpop.permute.xlu1 %673 }
 0x109   : > { %v672_v12 = vpop.permute.xlu0 %671  ;;  %v753_v15 = vsel %vm745_vm9, %v744_v1, %v674_v5 }
 0x10a   : > { %v752_v16 = vsel %vm745_vm9, %v743_v2, %v672_v12 }
 0x10b   : > { %1840 = vmatprep.mubr.msk.f32.mxu0 %vm766_vm10, %v752_v16 }
 0x10c   : > { %1841 = vmatmul.mubr.msk.f32.gmra.mrb[6].mxu0 %vm766_vm10, %v753_v15 }
 0x10d   : > { %1845 = vmatprep.mubr.msk.f32.mxu0 %vm323_vm0, %v2133_v3 }
 0x110   : > { %1846 = vmatmul.mubr.msk.f32.vlgmr.msra.gmra.mrb[8].mxu0 %vm323_vm0, %v2135_v4 }
 0x191   : > { %v1833_v56 = vpop.f32.mrb[0].mxu0 }
 0x192   : > { %v867_v60 = vadd.f32 %v1833_v56, %v2368_v21  ;;  %v861_v17 = vpop.f32.mrb[1].mxu0 }
 0x193   : > { %v862_v11 = vadd.f32 %v2368_v21, %v861_v17 }
 0x194   : > { %vm901_vm11 = vcmp.ge.f32.partialorder %v867_v60, 0.0  ;;  %v909_v18 = vmul.f32 0.01, %v867_v60 }
 0x195   : > { %vm900_vm12 = vcmp.ge.f32.partialorder %v862_v11, 0.0  ;;  %v908_v19 = vmul.f32 0.01, %v862_v11 }
 0x196   : > { %v917_v20 = vsel %vm901_vm11, %v867_v60, %v909_v18  ;;  %v1153_v18 = vpop.permute.xlu0 %1152 }
 0x197   : > { %1065 = vst.msk [vmem:[#allocation2 + $0x21] sm:$0xff] %vm323_vm0, %v917_v20  ;;  %v916_v22 = vsel %vm900_vm12, %v862_v11, %v908_v19 }
 0x198   : > { %1064 = vst.msk [vmem:[#allocation2 + $0x11] sm:$0xff] %vm323_vm0, %v916_v22 }
 0x19a   : > { %v1185_v20 = vpop.permute.xlu0 %1184 }
 0x19e   : > { %v1105_v3 = vld [vmem:[#allocation2 + $0x21] sm:$0xff] }
 0x19f   : > { %v2374_v23 = vld [vmem:[#allocation2 + $0x20] sm:$0xff]  ;;  %1250 = vrot.lane.b32.xlu0 %v1105_v3, %s2014_s18  ;;  %v2381_v25 = vld [vmem:[#allocation2 + $0x10] sm:$0xff] }
 0x1a0   : > { %1218 = vrot.lane.b32.xlu1 %v2374_v23, %s2013_s17  ;;  %v1113_v24 = vld [vmem:[#allocation2 + $0x22] sm:$0xff]  ;;  %v1104_v28 = vld [vmem:[#allocation2 + $0x11] sm:$0xff] }
 0x1a1   : > { %v1089_v8 = vld [vmem:[#allocation2 + $0x12] sm:$0xff] }
 0x1a3   : > { %1282 = vrot.lane.b32.xlu0 %v1113_v24, %s2015_s19 }
 0x1a4   : > { %1156 = vrot.lane.b32.xlu1 %v1105_v3, %s2011_s12 }
 0x1a7   : > { %1216 = vrot.lane.b32.xlu0 %v2381_v25, %s2013_s17 }
 0x1a8   : > { %1188 = vrot.lane.b32.xlu1 %v1113_v24, %s2012_s13 }
 0x1ab   : > { %1248 = vrot.lane.b32.xlu0 %v1104_v28, %s2014_s18 }
 0x1ac   : > { %1312 = vrot.lane.b32.xlu1 %v2374_v23, %s2016_s24 }
 0x1b0   : > { %1344 = vrot.lane.b32.xlu1 %v1105_v3, %s2017_s20 }
 0x1b1   : > { %v1836_v14 = vpop.f32.mrb[2].mxu0 }
 0x1b2   : > { %v877_v30 = vadd.f32 %v1836_v14, %v2368_v21  ;;  %v871_v32 = vpop.f32.mrb[3].mxu0 }
 0x1b3   : > { %v872_v34 = vadd.f32 %v2368_v21, %v871_v32 }
 0x1b4   : > { %1376 = vrot.lane.b32.xlu1 %v1113_v24, %s2018_s21  ;;  %vm903_vm13 = vcmp.ge.f32.partialorder %v877_v30, 0.0  ;;  %v911_v4 = vmul.f32 0.01, %v877_v30 }
 0x1b5   : > { %vm902_vm14 = vcmp.ge.f32.partialorder %v872_v34, 0.0  ;;  %v910_v6 = vmul.f32 0.01, %v872_v34 }
 0x1b6   : > { %v919_v35 = vsel %vm903_vm13, %v877_v30, %v911_v4 }
 0x1b7   : > { %1067 = vst.msk [vmem:[#allocation2 + $0x41] sm:$0xff] %vm323_vm0, %v919_v35  ;;  %v918_v7 = vsel %vm902_vm14, %v872_v34, %v910_v6 }
 0x1b8   : > { %1154 = vrot.lane.b32.xlu1 %v1104_v28, %s2011_s12  ;;  %1066 = vst.msk [vmem:[#allocation2 + $0x31] sm:$0xff] %vm323_vm0, %v918_v7 }
 0x1bc   : > { %1186 = vrot.lane.b32.xlu1 %v1089_v8, %s2012_s13 }
 0x1be   : > { %v2416_v39 = vld [vmem:[#allocation2 + $0x40] sm:$0xff] }
 0x1bf   : > { %1222 = vrot.lane.b32.xlu0 %v2416_v39, %s2013_s17  ;;  %v1084_v9 = vld [vmem:[#allocation2 + $0x41] sm:$0xff]  ;;  %v1083_v36 = vld [vmem:[#allocation2 + $0x31] sm:$0xff] }
 0x1c0   : > { %1280 = vrot.lane.b32.xlu1 %v1089_v8, %s2015_s19  ;;  %v1115_v10 = vld [vmem:[#allocation2 + $0x42] sm:$0xff]  ;;  %v1091_v45 = vld [vmem:[#allocation2 + $0x32] sm:$0xff] }
 0x1c1   : > { %v2447_v31 = vld [vmem:[#allocation2 + $0x30] sm:$0xff] }
 0x1c3   : > { %1160 = vrot.lane.b32.xlu0 %v1084_v9, %s2011_s12 }
 0x1c4   : > { %1254 = vrot.lane.b32.xlu1 %v1084_v9, %s2014_s18 }
 0x1c7   : > { %1286 = vrot.lane.b32.xlu0 %v1115_v10, %s2015_s19 }
 0x1c8   : > { %1192 = vrot.lane.b32.xlu1 %v1115_v10, %s2012_s13 }
 0x1cb   : > { %1158 = vrot.lane.b32.xlu0 %v1083_v36, %s2011_s12 }
 0x1cc   : > { %1316 = vrot.lane.b32.xlu1 %v2416_v39, %s2016_s24 }
 0x1cf   : > { %1190 = vrot.lane.b32.xlu0 %v1091_v45, %s2012_s13 }
 0x1d0   : > { %1348 = vrot.lane.b32.xlu1 %v1084_v9, %s2017_s20 }
 0x1d2   : > { %v1839_v47 = vpop.f32.mrb[4].mxu0 }
 0x1d3   : > { %v887_v49 = vadd.f32 %v1839_v47, %v2368_v21  ;;  %v881_v52 = vpop.f32.mrb[5].mxu0  ;;  %1314 = vrot.lane.b32.xlu0 %v2447_v31, %s2016_s24 }
 0x1d4   : > { %v882_v38 = vadd.f32 %v2368_v21, %v881_v52  ;;  %1380 = vrot.lane.b32.xlu1 %v1115_v10, %s2018_s21 }
 0x1d5   : > { %vm905_vm15 = vcmp.ge.f32.partialorder %v887_v49, 0.0  ;;  %v913_v42 = vmul.f32 0.01, %v887_v49 }
 0x1d6   : > { %vm904_vm1 = vcmp.ge.f32.partialorder %v882_v38, 0.0  ;;  %v912_v50 = vmul.f32 0.01, %v882_v38 }
 0x1d7   : > { %v921_v53 = vsel %vm905_vm15, %v887_v49, %v913_v42  ;;  %1346 = vrot.lane.b32.xlu0 %v1083_v36, %s2017_s20 }
 0x1d8   : > { %1069 = vst.msk [vmem:[#allocation2 + $0x61] sm:$0xff] %vm323_vm0, %v921_v53  ;;  %v920_v54 = vsel %vm904_vm1, %v882_v38, %v912_v50  ;;  %1220 = vrot.lane.b32.xlu1 %v2447_v31, %s2013_s17 }
 0x1d9   : > { %1068 = vst.msk [vmem:[#allocation2 + $0x51] sm:$0xff] %vm323_vm0, %v920_v54 }
 0x1db   : > { %1284 = vrot.lane.b32.xlu0 %v1091_v45, %s2015_s19 }
 0x1dc   : > { %1252 = vrot.lane.b32.xlu1 %v1083_v36, %s2014_s18 }
 0x1df   : > { %v1842_v57 = vpop.f32.mrb[6].mxu0  ;;  %v2461_v58 = vld [vmem:[#allocation2 + $0x60] sm:$0xff] }
 0x1e0   : > { %v897_v62 = vadd.f32 %v1842_v57, %v2368_v21  ;;  %v891_v63 = vpop.f32.mrb[7].mxu0  ;;  %1226 = vrot.lane.b32.xlu0 %v2461_v58, %s2013_s17  ;;  %1378 = vrot.lane.b32.xlu1 %v1091_v45, %s2018_s21  ;;  %v1086_v59 = vld [vmem:[#allocation2 + $0x61] sm:$0xff]  ;;  %v1085_v1 = vld [vmem:[#allocation2 + $0x51] sm:$0xff] }
 0x1e1   : > { %v892_v13 = vadd.f32 %v2368_v21, %v891_v63  ;;  %v1117_v0 = vld [vmem:[#allocation2 + $0x62] sm:$0xff]  ;;  %v1093_v2 = vld [vmem:[#allocation2 + $0x52] sm:$0xff]  ;;  %v2493_v21 = vpop.permute.xlu1 %1326 }
 0x1e2   : > { %vm907_vm2 = vcmp.ge.f32.partialorder %v897_v62, 0.0  ;;  %v915_v51 = vmul.f32 0.01, %v897_v62  ;;  %v2479_v5 = vld [vmem:[#allocation2 + $0x50] sm:$0xff] }
 0x1e3   : > { %vm906_vm11 = vcmp.ge.f32.partialorder %v892_v13, 0.0  ;;  %v914_v55 = vmul.f32 0.01, %v892_v13 }
 0x1e4   : > { %v923_v33 = vsel %vm907_vm2, %v897_v62, %v915_v51  ;;  %1164 = vrot.lane.b32.xlu0 %v1086_v59, %s2011_s12  ;;  %1258 = vrot.lane.b32.xlu1 %v1086_v59, %s2014_s18 }
 0x1e5   : > { %1071 = vst.msk [vmem:[#allocation2 + $0x81] sm:$0xff] %vm323_vm0, %v923_v33  ;;  %v922_v37 = vsel %vm906_vm11, %v892_v13, %v914_v55  ;;  %v2502_v17 = vpop.permute.xlu1 %1358 }
 0x1e6   : > { %1070 = vst.msk [vmem:[#allocation2 + $0x71] sm:$0xff] %vm323_vm0, %v922_v37 }
 0x1e8   : > { %1290 = vrot.lane.b32.xlu0 %v1117_v0, %s2015_s19  ;;  %1196 = vrot.lane.b32.xlu1 %v1117_v0, %s2012_s13 }
 0x1ec   : > { %1162 = vrot.lane.b32.xlu0 %v1085_v1, %s2011_s12  ;;  %1320 = vrot.lane.b32.xlu1 %v2461_v58, %s2016_s24  ;;  %v1103_v12 = vld [vmem:[#allocation2 + $0x80] sm:$0xff] }
 0x1ed   : > { %v1111_v15 = vld [vmem:[#allocation2 + $0x81] sm:$0xff]  ;;  %v2495_v56 = vld [vmem:[#allocation2 + $0x70] sm:$0xff] }
 0x1ee   : > { %v1119_v16 = vld [vmem:[#allocation2 + $0x82] sm:$0xff]  ;;  %v1110_v60 = vld [vmem:[#allocation2 + $0x71] sm:$0xff] }
 0x1ef   : > { %v1118_v11 = vld [vmem:[#allocation2 + $0x72] sm:$0xff] }
 0x1f0   : > { %1194 = vrot.lane.b32.xlu0 %v1093_v2, %s2012_s13  ;;  %1352 = vrot.lane.b32.xlu1 %v1086_v59, %s2017_s20 }
 0x1f4   : > { %1318 = vrot.lane.b32.xlu0 %v2479_v5, %s2016_s24  ;;  %1384 = vrot.lane.b32.xlu1 %v1117_v0, %s2018_s21 }
 0x1f8   : > { %1350 = vrot.lane.b32.xlu0 %v1085_v1, %s2017_s20  ;;  %1224 = vrot.lane.b32.xlu1 %v2479_v5, %s2013_s17 }
 0x1fc   : > { %1288 = vrot.lane.b32.xlu0 %v1093_v2, %s2015_s19  ;;  %1256 = vrot.lane.b32.xlu1 %v1085_v1, %s2014_s18 }
 0x200   : > { %1230 = vrot.lane.b32.xlu0 %v1103_v12, %s2013_s17  ;;  %1382 = vrot.lane.b32.xlu1 %v1093_v2, %s2018_s21 }
 0x204   : > { %1262 = vrot.lane.b32.xlu0 %v1111_v15, %s2014_s18  ;;  %1294 = vrot.lane.b32.xlu1 %v1119_v16, %s2015_s19 }
 0x208   : > { %1324 = vrot.lane.b32.xlu0 %v1103_v12, %s2016_s24  ;;  %1228 = vrot.lane.b32.xlu1 %v2495_v56, %s2013_s17 }
 0x20c   : > { %1356 = vrot.lane.b32.xlu0 %v1111_v15, %s2017_s20  ;;  %1260 = vrot.lane.b32.xlu1 %v1110_v60, %s2014_s18 }
 0x210   : > { %1166 = vrot.lane.b32.xlu0 %v1110_v60, %s2011_s12  ;;  %1292 = vrot.lane.b32.xlu1 %v1118_v11, %s2015_s19 }
 0x211   : > { %v1251_v24 = vpop.permute.xlu0 %1250 }
 0x212   : > { %v1219_v19 = vpop.permute.xlu1 %1218 }
 0x214   : > { %1198 = vrot.lane.b32.xlu0 %v1118_v11, %s2012_s13  ;;  %1390 = vrot.lane.b32.xlu1 %v2267_v48, %s2018_s21  ;;  %v1400_v48 = vsel %vm323_vm0, %v2280_v61, %v1153_v18 }
 0x215   : > { %v1283_v29 = vpop.permute.xlu0 %1282  ;;  %v1408_v4 = vsel %vm691_vm3, %v1400_v48, %v1185_v20 }
 0x216   : > { %v1157_v22 = vpop.permute.xlu1 %1156 }
 0x217   : > { %v1402_v62 = vsel %vm323_vm0, %v2374_v23, %v1157_v22 }
 0x218   : > { %1322 = vrot.lane.b32.xlu0 %v2495_v56, %s2016_s24 }
 0x219   : > { %v1217_v32 = vpop.permute.xlu0 %1216 }
 0x21a   : > { %v1189_v3 = vpop.permute.xlu1 %1188  ;;  %v1416_v7 = vsel %vm700_vm4, %v1408_v4, %v1217_v32 }
 0x21b   : > { %v1410_v63 = vsel %vm691_vm3, %v1402_v62, %v1189_v3 }
 0x21c   : > { %1354 = vrot.lane.b32.xlu0 %v1110_v60, %s2017_s20  ;;  %s2607_s20 = scalar_lea.vmem %s2647_s7, %s1750_s11 }
 0x21d   : > { %v1249_v6 = vpop.permute.xlu0 %1248 }
 0x21e   : > { %v1313_v28 = vpop.permute.xlu1 %1312  ;;  %v1424_v8 = vsel %vm709_vm5, %v1416_v7, %v1249_v6 }
 0x220   : > { %1386 = vrot.lane.b32.xlu0 %v1118_v11, %s2018_s21 }
 0x222   : > { %v1345_v14 = vpop.permute.xlu1 %1344 }
 0x224   : > { %1388 = vrot.lane.b32.xlu0 %v1119_v16, %s2018_s21 }
 0x226   : > { %v1377_v30 = vpop.permute.xlu1 %1376 }
 0x22a   : > { %v1155_v34 = vpop.permute.xlu1 %1154 }
 0x22b   : > { %v1401_v52 = vsel %vm323_vm0, %v2381_v25, %v1155_v34 }
 0x22e   : > { %v1187_v35 = vpop.permute.xlu1 %1186 }
 0x22f   : > { %v1409_v50 = vsel %vm691_vm3, %v1401_v52, %v1187_v35 }
 0x230   : > { %v1417_v53 = vsel %vm700_vm4, %v1409_v50, %v1219_v19  ;;  %v1847_v50 = vpop.f32.mrb[8].mxu0 }
 0x231   : > { %v1223_v9 = vpop.permute.xlu0 %1222  ;;  %v1425_v13 = vsel %vm709_vm5, %v1417_v53, %v1251_v24  ;;  %v1025_v53 = vpop.f32.mrb[9].mxu0 }
 0x232   : > { %v1281_v10 = vpop.permute.xlu1 %1280  ;;  %v1433_v33 = vsel %vm718_vm6, %v1425_v13, %v1283_v29 }
 0x233   : > { %v1432_v40 = vsel %vm718_vm6, %v1424_v8, %v1281_v10 }
 0x234   : > { %v1440_v27 = vsel %vm727_vm7, %v1432_v40, %v1313_v28 }
 0x235   : > { %v1448_v26 = vsel %vm736_vm8, %v1440_v27, %v1345_v14  ;;  %v1161_v36 = vpop.permute.xlu0 %1160 }
 0x236   : > { %v1255_v41 = vpop.permute.xlu1 %1254  ;;  %v1456_v61 = vsel %vm745_vm9, %v1448_v26, %v1377_v30  ;;  %v1404_v6 = vsel %vm323_vm0, %v2416_v39, %v1161_v36 }
 0x237   : > { %1867 = vmatprep.mubr.msk.f32.mxu1 %vm766_vm10, %v1456_v61 }
 0x239   : > { %v1287_v43 = vpop.permute.xlu0 %1286 }
 0x23a   : > { %v1193_v44 = vpop.permute.xlu1 %1192 }
 0x23b   : > { %v1412_v35 = vsel %vm691_vm3, %v1404_v6, %v1193_v44 }
 0x23d   : > { %v1159_v45 = vpop.permute.xlu0 %1158 }
 0x23e   : > { %v1317_v46 = vpop.permute.xlu1 %1316  ;;  %v1403_v29 = vsel %vm323_vm0, %v2447_v31, %v1159_v45 }
 0x241   : > { %v1191_v47 = vpop.permute.xlu0 %1190 }
 0x242   : > { %v1349_v49 = vpop.permute.xlu1 %1348  ;;  %v1411_v32 = vsel %vm691_vm3, %v1403_v29, %v1191_v47 }
 0x243   : > { %v1419_v34 = vsel %vm700_vm4, %v1411_v32, %v1223_v9 }
 0x244   : > { %v1427_v7 = vsel %vm709_vm5, %v1419_v34, %v1255_v41  ;;  %v1774_v34 = vld [vmem:[%s2644_s4] ss:$0 sm:$0xff] }
 0x245   : > { %v1315_v38 = vpop.permute.xlu0 %1314  ;;  %v1435_v27 = vsel %vm718_vm6, %v1427_v7, %v1287_v43 }
 0x246   : > { %v1381_v42 = vpop.permute.xlu1 %1380  ;;  %v1441_v0 = vsel %vm727_vm7, %v1433_v33, %v1315_v38 }
 0x249   : > { %v1347_v54 = vpop.permute.xlu0 %1346 }
 0x24a   : > { %v1221_v57 = vpop.permute.xlu1 %1220  ;;  %v1449_v23 = vsel %vm736_vm8, %v1441_v0, %v1347_v54 }
 0x24b   : > { %v1418_v51 = vsel %vm700_vm4, %v1410_v63, %v1221_v57 }
 0x24d   : > { %v1285_v55 = vpop.permute.xlu0 %1284 }
 0x24e   : > { %v1253_v59 = vpop.permute.xlu1 %1252 }
 0x24f   : > { %v1426_v25 = vsel %vm709_vm5, %v1418_v51, %v1253_v59 }
 0x250   : > { %v1434_v37 = vsel %vm718_vm6, %v1426_v25, %v1285_v55 }
 0x251   : > { %v1442_v1 = vsel %vm727_vm7, %v1434_v37, %v1317_v46 }
 0x252   : > { %v1227_v2 = vpop.permute.xlu0 %1226  ;;  %v1379_v12 = vpop.permute.xlu1 %1378  ;;  %v1450_v15 = vsel %vm736_vm8, %v1442_v1, %v1349_v49 }
 0x253   : > { %v1457_v16 = vsel %vm745_vm9, %v1449_v23, %v1379_v12  ;;  %v1458_v60 = vsel %vm745_vm9, %v1450_v15, %v1381_v42 }
 0x254   : > { %1868 = vmatmul.mubr.msk.f32.vlgmr.msra.gmra.mrb[6].mxu1 %vm766_vm10, %v1457_v16 }
 0x255   : > { %1870 = vmatprep.mubr.msk.f32.mxu1 %vm766_vm10, %v1458_v60 }
 0x256   : > { %v1165_v11 = vpop.permute.xlu0 %1164  ;;  %v1259_v18 = vpop.permute.xlu1 %1258 }
 0x257   : > { %v1406_v33 = vsel %vm323_vm0, %v2461_v58, %v1165_v11 }
 0x25a   : > { %v1291_v19 = vpop.permute.xlu0 %1290  ;;  %v1197_v20 = vpop.permute.xlu1 %1196 }
 0x25e   : > { %v1163_v22 = vpop.permute.xlu0 %1162  ;;  %v1321_v3 = vpop.permute.xlu1 %1320 }
 0x25f   : > { %v1405_v54 = vsel %vm323_vm0, %v2479_v5, %v1163_v22  ;;  %v1414_v5 = vsel %vm691_vm3, %v1406_v33, %v1197_v20 }
 0x262   : > { %v1195_v24 = vpop.permute.xlu0 %1194  ;;  %v1353_v28 = vpop.permute.xlu1 %1352 }
 0x263   : > { %v1413_v63 = vsel %vm691_vm3, %v1405_v54, %v1195_v24 }
 0x264   : > { %v1421_v59 = vsel %vm700_vm4, %v1413_v63, %v1227_v2 }
 0x266   : > { %v1319_v14 = vpop.permute.xlu0 %1318  ;;  %v1385_v30 = vpop.permute.xlu1 %1384 }
 0x267   : > { %v1443_v9 = vsel %vm727_vm7, %v1435_v27, %v1319_v14  ;;  %v1764_v14 = vld [vmem:[%s2646_s6] ss:$0 sm:$0xff] }
 0x268   : > { %v1026_v32 = vadd.f32 %v1764_v14, %v1025_v53  ;;  %v1905_v27 = vadd.f32 %v1774_v34, %v1764_v14 }
 0x26a   : > { %v1351_v48 = vpop.permute.xlu0 %1350  ;;  %v1225_v4 = vpop.permute.xlu1 %1224 }
 0x26b   : > { %v1420_v8 = vsel %vm700_vm4, %v1412_v35, %v1225_v4  ;;  %v1451_v39 = vsel %vm736_vm8, %v1443_v9, %v1351_v48 }
 0x26e   : > { %v1289_v10 = vpop.permute.xlu0 %1288  ;;  %v1257_v40 = vpop.permute.xlu1 %1256 }
 0x26f   : > { %v1428_v31 = vsel %vm709_vm5, %v1420_v8, %v1257_v40 }
 0x270   : > { %v1436_v26 = vsel %vm718_vm6, %v1428_v31, %v1289_v10 }
 0x271   : > { %v1444_v61 = vsel %vm727_vm7, %v1436_v26, %v1321_v3 }
 0x272   : > { %v1231_v36 = vpop.permute.xlu0 %1230  ;;  %v1383_v44 = vpop.permute.xlu1 %1382  ;;  %v1452_v41 = vsel %vm736_vm8, %v1444_v61, %v1353_v28 }
 0x273   : > { %v1459_v45 = vsel %vm745_vm9, %v1451_v39, %v1383_v44  ;;  %v1460_v46 = vsel %vm745_vm9, %v1452_v41, %v1385_v30  ;;  %v1031_v30 = vadd.f32 %v1847_v50, %v1764_v14 }
 0x274   : > { %1871 = vmatmul.mubr.msk.f32.gmra.mrb[0].mxu1 %vm766_vm10, %v1459_v45 }
 0x275   : > { %1873 = vmatprep.mubr.msk.f32.mxu1 %vm766_vm10, %v1460_v46 }
 0x276   : > { %v1263_v43 = vpop.permute.xlu0 %1262  ;;  %v1295_v49 = vpop.permute.xlu1 %1294 }
 0x27a   : > { %v1325_v47 = vpop.permute.xlu0 %1324  ;;  %v1229_v38 = vpop.permute.xlu1 %1228 }
 0x27b   : > { %v1422_v1 = vsel %vm700_vm4, %v1414_v5, %v1229_v38 }
 0x27e   : > { %v1357_v52 = vpop.permute.xlu0 %1356  ;;  %v1261_v13 = vpop.permute.xlu1 %1260 }
 0x27f   : > { %v1430_v12 = vsel %vm709_vm5, %v1422_v1, %v1261_v13 }
 0x282   : > { %v1167_v42 = vpop.permute.xlu0 %1166  ;;  %v1293_v0 = vpop.permute.xlu1 %1292 }
 0x283   : > { %v1407_v57 = vsel %vm323_vm0, %v2495_v56, %v1167_v42  ;;  %v1429_v56 = vsel %vm709_vm5, %v1421_v59, %v1259_v18  ;;  %v1438_v2 = vsel %vm718_vm6, %v1430_v12, %v1293_v0 }
 0x284   : > { %v1437_v16 = vsel %vm718_vm6, %v1429_v56, %v1291_v19  ;;  %v1446_v18 = vsel %vm727_vm7, %v1438_v2, %v1325_v47 }
 0x285   : > { %v1454_v19 = vsel %vm736_vm8, %v1446_v18, %v1357_v52 }
 0x286   : > { %v1199_v62 = vpop.permute.xlu0 %1198  ;;  %v1391_v24 = vpop.permute.xlu1 %1390 }
 0x287   : > { %v1415_v51 = vsel %vm691_vm3, %v1407_v57, %v1199_v62 }
 0x288   : > { %v1423_v55 = vsel %vm700_vm4, %v1415_v51, %v1231_v36 }
 0x289   : > { %v1431_v37 = vsel %vm709_vm5, %v1423_v55, %v1263_v43 }
 0x28a   : > { %v1323_v25 = vpop.permute.xlu0 %1322  ;;  %v1439_v15 = vsel %vm718_vm6, %v1431_v37, %v1295_v49 }
 0x28b   : > { %v1445_v58 = vsel %vm727_vm7, %v1437_v16, %v1323_v25  ;;  %v1447_v60 = vsel %vm727_vm7, %v1439_v15, %v2493_v21 }
 0x28c   : > { %v1455_v3 = vsel %vm736_vm8, %v1447_v60, %v2502_v17 }
 0x28d   : > { %v1463_v21 = vsel %vm745_vm9, %v1455_v3, %v1391_v24 }
 0x28e   : > { %v1355_v23 = vpop.permute.xlu0 %1354 }
 0x28f   : > { %v1453_v11 = vsel %vm736_vm8, %v1445_v58, %v1355_v23 }
 0x292   : > { %v1387_v20 = vpop.permute.xlu0 %1386 }
 0x293   : > { %v1461_v22 = vsel %vm745_vm9, %v1453_v11, %v1387_v20 }
 0x294   : > { %1874 = vmatmul.mubr.msk.f32.gmra.mrb[2].mxu1 %vm766_vm10, %v1461_v22 }
 0x296   : > { %v1389_v28 = vpop.permute.xlu0 %1388 }
 0x297   : > { %v1462_v29 = vsel %vm745_vm9, %v1454_v19, %v1389_v28 }
 0x298   : > { %1876 = vmatprep.mubr.msk.f32.mxu1 %vm766_vm10, %v1462_v29 }
 0x299   : > { %1877 = vmatmul.mubr.msk.f32.gmra.mrb[4].mxu1 %vm766_vm10, %v1463_v21 }
 0x327   : > { %v1869_v17 = vpop.f32.mrb[6].mxu1 }
 0x328   : > { %v1898_v48 = vadd.f32 %v1869_v17, %v1031_v30  ;;  %v1569_v4 = vpop.f32.mrb[7].mxu1 }
 0x329   : > { %v1901_v6 = vadd.f32 %v1569_v4, %v1026_v32 }
 0x32a   : > { %v1899_v35 = vadd.f32 %v1898_v48, %v1774_v34 }
 0x32b   : > { %v1902_v7 = vadd.f32 %v1901_v6, %v1774_v34 }
 0x32c   : > { %vm1617_vm3 = vcmp.ge.f32.partialorder %v1899_v35, 0.0  ;;  %v1625_v8 = vmul.f32 0.01, %v1899_v35 }
 0x32d   : > { %vm1616_vm4 = vcmp.ge.f32.partialorder %v1902_v7, 0.0  ;;  %v1624_v10 = vmul.f32 0.01, %v1902_v7 }
 0x32e   : > { %v1633_v40 = vsel %vm1617_vm3, %v1899_v35, %v1625_v8 }
 0x32f   : > { %1641 = vst.msk [vmem:[%s2607_s20 + $0x8] sm:$0xff] %vm323_vm0, %v1633_v40  ;;  %v1632_v31 = vsel %vm1616_vm4, %v1902_v7, %v1624_v10 }
 0x330   : > { %1640 = vst.msk [vmem:[%s2607_s20] sm:$0xff] %vm323_vm0, %v1632_v31 }
 0x347   : > { %v1872_v26 = vpop.f32.mrb[0].mxu1 }
 0x348   : > { %v1904_v9 = vadd.f32 %v1905_v27, %v1872_v26  ;;  %v1579_v61 = vpop.f32.mrb[1].mxu1 }
 0x349   : > { %v1906_v39 = vadd.f32 %v1905_v27, %v1579_v61 }
 0x34a   : > { %vm1619_vm5 = vcmp.ge.f32.partialorder %v1904_v9, 0.0  ;;  %v1627_v36 = vmul.f32 0.01, %v1904_v9 }
 0x34b   : > { %vm1618_vm6 = vcmp.ge.f32.partialorder %v1906_v39, 0.0  ;;  %v1626_v44 = vmul.f32 0.01, %v1906_v39 }
 0x34c   : > { %v1635_v41 = vsel %vm1619_vm5, %v1904_v9, %v1627_v36 }
 0x34d   : > { %1643 = vst.msk [vmem:[%s2607_s20 + $0x18] sm:$0xff] %vm323_vm0, %v1635_v41  ;;  %v1634_v45 = vsel %vm1618_vm6, %v1906_v39, %v1626_v44 }
 0x34e   : > { %1642 = vst.msk [vmem:[%s2607_s20 + $0x10] sm:$0xff] %vm323_vm0, %v1634_v45 }
 0x367   : > { %v1875_v46 = vpop.f32.mrb[2].mxu1 }
 0x368   : > { %v1908_v43 = vadd.f32 %v1905_v27, %v1875_v46  ;;  %v1589_v47 = vpop.f32.mrb[3].mxu1 }
 0x369   : > { %v1910_v49 = vadd.f32 %v1905_v27, %v1589_v47 }
 0x36a   : > { %vm1621_vm7 = vcmp.ge.f32.partialorder %v1908_v43, 0.0  ;;  %v1629_v52 = vmul.f32 0.01, %v1908_v43 }
 0x36b   : > { %vm1620_vm8 = vcmp.ge.f32.partialorder %v1910_v49, 0.0  ;;  %v1628_v38 = vmul.f32 0.01, %v1910_v49 }
 0x36c   : > { %v1637_v42 = vsel %vm1621_vm7, %v1908_v43, %v1629_v52  ;;  %v1878_v50 = vpop.f32.mrb[4].mxu1 }
 0x36d   : > { %1645 = vst.msk [vmem:[%s2607_s20 + $0x28] sm:$0xff] %vm323_vm0, %v1637_v42  ;;  %v1636_v53 = vsel %vm1620_vm8, %v1910_v49, %v1628_v38  ;;  %v1912_v54 = vadd.f32 %v1905_v27, %v1878_v50  ;;  %v1599_v57 = vpop.f32.mrb[5].mxu1 }
 0x36e   : > { %1644 = vst.msk [vmem:[%s2607_s20 + $0x20] sm:$0xff] %vm323_vm0, %v1636_v53  ;;  %v1914_v62 = vadd.f32 %v1905_v27, %v1599_v57 }
 0x36f   : > { %vm1623_vm9 = vcmp.ge.f32.partialorder %v1912_v54, 0.0  ;;  %v1631_v63 = vmul.f32 0.01, %v1912_v54 }
 0x370   : > { %vm1622_vm10 = vcmp.ge.f32.partialorder %v1914_v62, 0.0  ;;  %v1630_v13 = vmul.f32 0.01, %v1914_v62 }
 0x371   : > { %v1639_v51 = vsel %vm1623_vm9, %v1912_v54, %v1631_v63 }
 0x372   : > { %1647 = vst.msk [vmem:[%s2607_s20 + $0x38] sm:$0xff] %vm323_vm0, %v1639_v51  ;;  %v1638_v55 = vsel %vm1622_vm10, %v1914_v62, %v1630_v13 }
 0x373   : > { %1646 = vst.msk [vmem:[%s2607_s20 + $0x30] sm:$0xff] %vm323_vm0, %v1638_v55 }
 0x374 PF: > { %s17_s28 = sadd.s32 1, %s2008_s28   ;;  %s2648_s24 = smov %s2000_s26 }
 0x375   : > { %p14_p7 = scmp.ge.s32.totalorder %s17_s28, 6   ;;  %s2649_s25 = smov %s2004_s27 }
 0x376   : > { %s2650_s26 = smov %s2653_s29  ;;  %s2651_s27 = smov %s2657_s30 }
 0x377   :  { %16 = sbr.rel (!%p14_p7) target bundleno = 3 (0x3), region = 80 }

// kernel: pam_forward.5
= control target key start
LH: loop header
LB: loop body
LE: loop exit
PB: predicated region body
PF: predicated region fallthrough
CT: control target
= control target key end

     0   :  { %s2746_s27 = smov 0   ;;  %s2748_s28 = smov 0   ;;  %s3150_s0 = inlined_call_operand.vmem [shape: f32[2,2,8,8,4], index: 0, kind: input, shape index: {}, may-alias: {0,6}]   ;;  %s3151_s1 = inlined_call_operand.vmem [shape: f32[2,2,8,8,4], index: 1, kind: input, shape index: {}]   ;;  %s3152_s2 = inlined_call_operand.vmem [shape: f32[4,8], index: 2, kind: input, shape index: {}]   ;;  %s3153_s3 = inlined_call_operand.vmem [shape: f32[1,8], index: 3, kind: input, shape index: {}]   ;;  %s3154_s4 = inlined_call_operand.vmem [shape: f32[2,8,8,8], index: 4, kind: input, shape index: {}, may-alias: {4,7}]   ;;  %s3155_s5 = inlined_call_operand.vmem [shape: f32[2,8,8,8], index: 5, kind: input, shape index: {}, may-alias: {5,8}]   ;;  %s3156_s6 = inlined_call_operand.vmem [shape: f32[2,2,8,8,4], index: 6, kind: output, shape index: {0}, may-alias: {0,6}]   ;;  %s3157_s7 = inlined_call_operand.vmem [shape: f32[2,8,8,8], index: 7, kind: output, shape index: {1}, may-alias: {4,7}]   ;;  %s3158_s8 = inlined_call_operand.vmem [shape: f32[2,8,8,8], index: 8, kind: output, shape index: {2}, may-alias: {5,8}]  }
   0x1   :  { %s2750_s29 = smov 0  }
   0x2 LB: > { %s2762_s30 = sadd.s32 4294967295, %s2696_s29   ;;  %s2765_s9 = sadd.s32 1, %s2696_s29   ;;  %s2696_s29 = sphi %s2750_s29, %s3163_s29   ;;  %s2692_s28 = sphi %s2748_s28, %s3162_s28   ;;  %s2688_s27 = sphi %s2746_s27, %s3161_s27  }
   0x3   : > { %s23_s10 = ssub.s32 %s2696_s29, %s2765_s9  ;;  %s26_s11 = sadd.s32 1, %s2692_s28 }
   0x4   : > { %p24_p0 = scmp.eq.s32.totalorder %s23_s10, 0  ;;  %p33_p1 = scmp.ne.s32.totalorder %s2692_s28, %s2688_s27 }
   0x5   : > { %p34_p2 = scmp.eq.s32.totalorder %s2696_s29, 0  ;;  %p183_p3 = scmp.eq.s32.totalorder %s2762_s30, 1 }
   0x6   : > { %s2775_s12 = scalar_select %p24_p0, %s2692_s28, %s26_s11  }
   0x7   : > { %p2777_p4 = por %p34_p2, %p33_p1  ;;  %p2781_p5 = por %p183_p3, %p33_p1 }
   0x8   : > { %p2411_p6 = scmp.ge.s32.totalorder %s2696_s29, 2 }
   0xa   : > { %263 = sbr.rel (%p2411_p6) target bundleno = 41 (0x29), region = 24 }
  0x11   : > { %266 = sbr.rel (!%p2777_p4) target bundleno = 29 (0x1d), region = 28  ;;  %s268_s15 = sand.u32 (%p2777_p4), 1, %s2692_s28  }
  0x12   : > { %s2485_s16 = sshll.u32 (%p2777_p4), %s2696_s29, 6  ;;  %s2412_s17 = sshll.u32 (%p2777_p4), %s268_s15, 7 }
  0x13   : > { %s2793_s20 = scalar_lea.vmem (%p2777_p4), %s3150_s0, %s2485_s16  ;;  %s270_s21 = scalar_lea.vmem (%p2777_p4), [#allocation2], %s2412_s17 }
  0x14   : > { %v331_v0 = vld [vmem:[%s2793_s20] sm:$0xff] (%p2777_p4)  ;;  %v333_v1 = vld [vmem:[%s2793_s20 + $0x8] sm:$0xff] (%p2777_p4)  ;;  %v335_v2 = vld [vmem:[%s2793_s20 + $0x10] sm:$0xff] (%p2777_p4) }
  0x15   : > { %332 = vst [vmem:[%s270_s21] sm:$0xff] (%p2777_p4), %v331_v0  ;;  %334 = vst [vmem:[%s270_s21 + $0x8] sm:$0xff] (%p2777_p4), %v333_v1  ;;  %v337_v3 = vld [vmem:[%s2793_s20 + $0x18] sm:$0xff] (%p2777_p4)  ;;  %v339_v4 = vld [vmem:[%s2793_s20 + $0x20] sm:$0xff] (%p2777_p4) }
  0x16   : > { %336 = vst [vmem:[%s270_s21 + $0x10] sm:$0xff] (%p2777_p4), %v335_v2  ;;  %v341_v5 = vld [vmem:[%s2793_s20 + $0x28] sm:$0xff] (%p2777_p4)  ;;  %338 = vst [vmem:[%s270_s21 + $0x18] sm:$0xff] (%p2777_p4), %v337_v3  ;;  %v343_v6 = vld [vmem:[%s2793_s20 + $0x30] sm:$0xff] (%p2777_p4) }
  0x17   : > { %340 = vst [vmem:[%s270_s21 + $0x20] sm:$0xff] (%p2777_p4), %v339_v4  ;;  %342 = vst [vmem:[%s270_s21 + $0x28] sm:$0xff] (%p2777_p4), %v341_v5  ;;  %v345_v7 = vld [vmem:[%s2793_s20 + $0x38] sm:$0xff] (%p2777_p4)  ;;  %v347_v8 = vld [vmem:[%s2793_s20 + $0x80] sm:$0xff] (%p2777_p4) }
  0x18   : > { %344 = vst [vmem:[%s270_s21 + $0x30] sm:$0xff] %v343_v6  ;;  %346 = vst [vmem:[%s270_s21 + $0x38] sm:$0xff] %v345_v7  ;;  %v349_v9 = vld [vmem:[%s2793_s20 + $0x88] sm:$0xff]  ;;  %v351_v10 = vld [vmem:[%s2793_s20 + $0x90] sm:$0xff] }
  0x19   : > { %348 = vst [vmem:[%s270_s21 + $0x40] sm:$0xff] %v347_v8  ;;  %v353_v11 = vld [vmem:[%s2793_s20 + $0x98] sm:$0xff]  ;;  %350 = vst [vmem:[%s270_s21 + $0x48] sm:$0xff] %v349_v9  ;;  %v355_v12 = vld [vmem:[%s2793_s20 + $0xa0] sm:$0xff] }
  0x1a   : > { %352 = vst [vmem:[%s270_s21 + $0x50] sm:$0xff] %v351_v10  ;;  %354 = vst [vmem:[%s270_s21 + $0x58] sm:$0xff] %v353_v11  ;;  %v357_v13 = vld [vmem:[%s2793_s20 + $0xa8] sm:$0xff]  ;;  %v359_v14 = vld [vmem:[%s2793_s20 + $0xb0] sm:$0xff] }
  0x1b   : > { %356 = vst [vmem:[%s270_s21 + $0x60] sm:$0xff] %v355_v12  ;;  %358 = vst [vmem:[%s270_s21 + $0x68] sm:$0xff] %v357_v13  ;;  %v361_v15 = vld [vmem:[%s2793_s20 + $0xb8] sm:$0xff] }
  0x1c   : > { %360 = vst [vmem:[%s270_s21 + $0x70] sm:$0xff] %v359_v14  ;;  %362 = vst [vmem:[%s270_s21 + $0x78] sm:$0xff] %v361_v15 }
  0x1d PF: > { %368 = sbr.rel (!%p2777_p4) target bundleno = 41 (0x29), region = 66  ;;  %s370_s22 = sand.u32 (%p2777_p4), 1, %s2692_s28  }
  0x1e   : > { %s2486_s23 = sshll.u32 (%p2777_p4), %s2696_s29, 6  ;;  %s2415_s24 = sshll.u32 (%p2777_p4), %s370_s22, 7 }
  0x1f   : > { %s2818_s10 = scalar_lea.vmem (%p2777_p4), %s3151_s1, %s2486_s23  ;;  %s372_s11 = scalar_lea.vmem (%p2777_p4), [#allocation3], %s2415_s24 }
  0x20   : > { %v433_v16 = vld [vmem:[%s2818_s10] sm:$0xff] (%p2777_p4)  ;;  %v435_v17 = vld [vmem:[%s2818_s10 + $0x8] sm:$0xff] (%p2777_p4)  ;;  %v437_v18 = vld [vmem:[%s2818_s10 + $0x10] sm:$0xff] (%p2777_p4) }
  0x21   : > { %434 = vst [vmem:[%s372_s11] sm:$0xff] (%p2777_p4), %v433_v16  ;;  %436 = vst [vmem:[%s372_s11 + $0x8] sm:$0xff] (%p2777_p4), %v435_v17  ;;  %v439_v19 = vld [vmem:[%s2818_s10 + $0x18] sm:$0xff] (%p2777_p4)  ;;  %v441_v20 = vld [vmem:[%s2818_s10 + $0x20] sm:$0xff] (%p2777_p4) }
  0x22   : > { %438 = vst [vmem:[%s372_s11 + $0x10] sm:$0xff] (%p2777_p4), %v437_v18  ;;  %v443_v21 = vld [vmem:[%s2818_s10 + $0x28] sm:$0xff] (%p2777_p4)  ;;  %440 = vst [vmem:[%s372_s11 + $0x18] sm:$0xff] (%p2777_p4), %v439_v19  ;;  %v445_v22 = vld [vmem:[%s2818_s10 + $0x30] sm:$0xff] (%p2777_p4) }
  0x23   : > { %442 = vst [vmem:[%s372_s11 + $0x20] sm:$0xff] (%p2777_p4), %v441_v20  ;;  %444 = vst [vmem:[%s372_s11 + $0x28] sm:$0xff] (%p2777_p4), %v443_v21  ;;  %v447_v23 = vld [vmem:[%s2818_s10 + $0x38] sm:$0xff] (%p2777_p4)  ;;  %v449_v24 = vld [vmem:[%s2818_s10 + $0x80] sm:$0xff] (%p2777_p4) }
  0x24   : > { %446 = vst [vmem:[%s372_s11 + $0x30] sm:$0xff] %v445_v22  ;;  %448 = vst [vmem:[%s372_s11 + $0x38] sm:$0xff] %v447_v23  ;;  %v451_v25 = vld [vmem:[%s2818_s10 + $0x88] sm:$0xff]  ;;  %v453_v26 = vld [vmem:[%s2818_s10 + $0x90] sm:$0xff] }
  0x25   : > { %450 = vst [vmem:[%s372_s11 + $0x40] sm:$0xff] %v449_v24  ;;  %v455_v27 = vld [vmem:[%s2818_s10 + $0x98] sm:$0xff]  ;;  %452 = vst [vmem:[%s372_s11 + $0x48] sm:$0xff] %v451_v25  ;;  %v457_v28 = vld [vmem:[%s2818_s10 + $0xa0] sm:$0xff] }
  0x26   : > { %454 = vst [vmem:[%s372_s11 + $0x50] sm:$0xff] %v453_v26  ;;  %456 = vst [vmem:[%s372_s11 + $0x58] sm:$0xff] %v455_v27  ;;  %v459_v29 = vld [vmem:[%s2818_s10 + $0xa8] sm:$0xff]  ;;  %v461_v30 = vld [vmem:[%s2818_s10 + $0xb0] sm:$0xff] }
  0x27   : > { %458 = vst [vmem:[%s372_s11 + $0x60] sm:$0xff] %v457_v28  ;;  %460 = vst [vmem:[%s372_s11 + $0x68] sm:$0xff] %v459_v29  ;;  %v463_v31 = vld [vmem:[%s2818_s10 + $0xb8] sm:$0xff] }
  0x28   : > { %462 = vst [vmem:[%s372_s11 + $0x70] sm:$0xff] %v461_v30  ;;  %464 = vst [vmem:[%s372_s11 + $0x78] sm:$0xff] %v463_v31 }
  0x29 PF: > { %p2418_p7 = scmp.ge.s32.totalorder %s2696_s29, 1  ;;  %p485_p8 = scmp.lt.s32.totalorder %s2696_s29, 3 }
  0x2b   : > { %p486_p9 = pnand %p2418_p7, %p485_p8 }
  0x2c   : > { %v591_v32 = vld [vmem:[%s3152_s2] sm:$0xf] (!%p486_p9)  ;;  %vm648_vm0 = vcmask (!%p486_p9), 1043456   ;;  %s492_s16 = sand.u32 (!%p486_p9), 1, %s2688_s27   ;;  %vm599_vm1 = vcmask (!%p486_p9), 31744   ;;  %v2698_v17 = vmov (!%p486_p9), 0.0  }
  0x2d   : > { %489 = sbr.rel (%p486_p9) target bundleno = 659 (0x293), region = 112  ;;  %2541 = vmatprep.subr.msk.mxu0 (!%p486_p9), %vm648_vm0, %v591_v32  ;;  %s2419_s17 = sshll.u32 (!%p486_p9), %s492_s16, 7  ;;  %2567 = vmatprep.subr.mxu1 (!%p486_p9), %v2698_v17  ;;  %vm2699_vm2 = vmmov (!%p486_p9), 0   ;;  %v2430_v27 = vld [vmem:[%s3153_s3] ss:$0 sm:$0xff] (!%p486_p9)  ;;  %vm1445_vm3 = vcmask (!%p486_p9), 64512  }
  0x2e   : > { %2542 = vmatpush3.msk.msra.mxu0 (!%p486_p9), %vm648_vm0, %v591_v32  ;;  %s2842_s18 = scalar_lea.vmem (!%p486_p9), [#allocation3], %s2419_s17  ;;  %s2845_s29 = scalar_lea.vmem (!%p486_p9), [#allocation2], %s2419_s17  ;;  %2569 = vmatprep.mubr.msk.f32.mxu1 (!%p486_p9), %vm2699_vm2, %v2698_v17 }
  0x2f   : > { %v575_v33 = vld [vmem:[%s2842_s18] sm:$0xff] (!%p486_p9)  ;;  %v576_v35 = vld [vmem:[%s2842_s18 + $0x8] sm:$0xff] (!%p486_p9)  ;;  %v577_v38 = vld [vmem:[%s2842_s18 + $0x10] sm:$0xff] (!%p486_p9)  ;;  %s2857_s27 = scalar_lea.vmem (!%p486_p9), [#allocation4], %s2419_s17  ;;  %2607 = vmatprep.subr.mxu0 (!%p486_p9), %v2698_v17  ;;  %s2700_s21 = smov (!%p486_p9), 124  }
  0x30   : > { %v2094_v34 = vld [vmem:[%s2845_s29] sm:$0xff] (!%p486_p9)  ;;  %2543 = vmatprep.mubr.msk.f32.mxu0 (!%p486_p9), %vm599_vm1, %v575_v33  ;;  %v2095_v37 = vld [vmem:[%s2845_s29 + $0x8] sm:$0xff] (!%p486_p9)  ;;  %v2096_v39 = vld [vmem:[%s2845_s29 + $0x10] sm:$0xff] (!%p486_p9)  ;;  %p555_p10 = scmp.lt.s32.totalorder (!%p486_p9), %s2762_s30, 1 }
  0x31   : > { %v2110_v36 = vadd.f32 (!%p486_p9), %v2094_v34, %v575_v33  ;;  %2544 = vmatmul.mubr.msk.f32.vlgmr.msra.gmra.mrb[0].mxu0 (!%p486_p9), %vm599_vm1, %v576_v35  ;;  %v2111_v40 = vadd.f32 (!%p486_p9), %v2095_v37, %v576_v35  ;;  %v2112_v41 = vadd.f32 (!%p486_p9), %v2096_v39, %v577_v38  ;;  %v578_v42 = vld [vmem:[%s2842_s18 + $0x18] sm:$0xff] (!%p486_p9)  ;;  %v579_v44 = vld [vmem:[%s2842_s18 + $0x20] sm:$0xff] (!%p486_p9)  ;;  %v580_v47 = vld [vmem:[%s2842_s18 + $0x28] sm:$0xff] (!%p486_p9) }
  0x32   : > { %v2097_v43 = vld [vmem:[%s2845_s29 + $0x18] sm:$0xff] (!%p486_p9)  ;;  %2546 = vmatprep.mubr.msk.f32.mxu0 (!%p486_p9), %vm599_vm1, %v577_v38  ;;  %v2098_v46 = vld [vmem:[%s2845_s29 + $0x20] sm:$0xff] (!%p486_p9)  ;;  %v2099_v48 = vld [vmem:[%s2845_s29 + $0x28] sm:$0xff] (!%p486_p9) }
  0x33   : > { %2126 = vst.msk [vmem:[%s2857_s27] sm:$0xff] (!%p486_p9), %vm599_vm1, %v2110_v36  ;;  %v2113_v45 = vadd.f32 (!%p486_p9), %v2097_v43, %v578_v42  ;;  %2127 = vst.msk [vmem:[%s2857_s27 + $0x8] sm:$0xff] (!%p486_p9), %vm599_vm1, %v2111_v40  ;;  %v2114_v49 = vadd.f32 (!%p486_p9), %v2098_v46, %v579_v44  ;;  %v2115_v50 = vadd.f32 (!%p486_p9), %v2099_v48, %v580_v47  ;;  %v581_v51 = vld [vmem:[%s2842_s18 + $0x30] sm:$0xff] (!%p486_p9)  ;;  %v582_v53 = vld [vmem:[%s2842_s18 + $0x38] sm:$0xff] (!%p486_p9) }
  0x34   : > { %2128 = vst.msk [vmem:[%s2857_s27 + $0x10] sm:$0xff] %vm599_vm1, %v2112_v41  ;;  %v2100_v52 = vld [vmem:[%s2845_s29 + $0x30] sm:$0xff]  ;;  %v2101_v55 = vld [vmem:[%s2845_s29 + $0x38] sm:$0xff]  ;;  %v583_v56 = vld [vmem:[%s2842_s18 + $0x40] sm:$0xff]  ;;  %s556_s22 = scalar_select %p555_p10, %s2762_s30, 1 }
  0x35   : > { %2129 = vst.msk [vmem:[%s2857_s27 + $0x18] sm:$0xff] %vm599_vm1, %v2113_v45  ;;  %v2116_v54 = vadd.f32 %v2100_v52, %v581_v51  ;;  %v2102_v57 = vld [vmem:[%s2845_s29 + $0x40] sm:$0xff]  ;;  %2547 = vmatmul.mubr.msk.f32.gmra.mrb[2].mxu0 %vm599_vm1, %v578_v42  ;;  %2130 = vst.msk [vmem:[%s2857_s27 + $0x20] sm:$0xff] %vm599_vm1, %v2114_v49  ;;  %v2117_v58 = vadd.f32 %v2101_v55, %v582_v53  ;;  %v584_v60 = vld [vmem:[%s2842_s18 + $0x48] sm:$0xff]  ;;  %s2491_s20 = sshll.u32 (%p2781_p5), %s2762_s30, 6 }
  0x36   : > { %2131 = vst.msk [vmem:[%s2857_s27 + $0x28] sm:$0xff] %vm599_vm1, %v2115_v50  ;;  %v2118_v59 = vadd.f32 %v2102_v57, %v583_v56  ;;  %v2103_v61 = vld [vmem:[%s2845_s29 + $0x48] sm:$0xff]  ;;  %v585_v62 = vld [vmem:[%s2842_s18 + $0x50] sm:$0xff]  ;;  %2549 = vmatprep.mubr.msk.f32.mxu0 %vm599_vm1, %v579_v44  ;;  %v586_v1 = vld [vmem:[%s2842_s18 + $0x58] sm:$0xff]  ;;  %s3061_s23 = sshll.u32 %s556_s22, 6 }
  0x37   : > { %2132 = vst.msk [vmem:[%s2857_s27 + $0x30] sm:$0xff] %vm599_vm1, %v2116_v54  ;;  %v2119_v63 = vadd.f32 %v2103_v61, %v584_v60  ;;  %v2104_v0 = vld [vmem:[%s2845_s29 + $0x50] sm:$0xff]  ;;  %v2105_v2 = vld [vmem:[%s2845_s29 + $0x58] sm:$0xff]  ;;  %2133 = vst.msk [vmem:[%s2857_s27 + $0x38] sm:$0xff] %vm599_vm1, %v2117_v58  ;;  %s559_s26 = scalar_lea.vmem %s3154_s4, %s3061_s23  ;;  %s3071_s13 = scalar_lea.vmem %s3157_s7, %s3061_s23 }
  0x38   : > { %2134 = vst.msk [vmem:[%s2857_s27 + $0x40] sm:$0xff] %vm599_vm1, %v2118_v59  ;;  %v2120_v3 = vadd.f32 %v2104_v0, %v585_v62  ;;  %v2121_v4 = vadd.f32 %v2105_v2, %v586_v1  ;;  %v587_v5 = vld [vmem:[%s2842_s18 + $0x60] sm:$0xff]  ;;  %v588_v7 = vld [vmem:[%s2842_s18 + $0x68] sm:$0xff]  ;;  %v589_v10 = vld [vmem:[%s2842_s18 + $0x70] sm:$0xff]  ;;  %s564_s17 = scalar_lea.vmem %s3155_s5, %s3061_s23  ;;  %s3091_s19 = scalar_lea.vmem %s3158_s8, %s3061_s23 }
  0x39   : > { %v2106_v6 = vld [vmem:[%s2845_s29 + $0x60] sm:$0xff]  ;;  %2135 = vst.msk [vmem:[%s2857_s27 + $0x48] sm:$0xff] %vm599_vm1, %v2119_v63  ;;  %v2107_v9 = vld [vmem:[%s2845_s29 + $0x68] sm:$0xff]  ;;  %v2108_v11 = vld [vmem:[%s2845_s29 + $0x70] sm:$0xff]  ;;  %2550 = vmatmul.mubr.msk.f32.gmra.mrb[4].mxu0 %vm599_vm1, %v580_v47  ;;  %s2161_s23 = scalar_lea.vmem (%p2781_p5), %s3156_s6, %s2491_s20 }
  0x3a   : > { %v2122_v8 = vadd.f32 %v2106_v6, %v587_v5  ;;  %2136 = vst.msk [vmem:[%s2857_s27 + $0x50] sm:$0xff] %vm599_vm1, %v2120_v3  ;;  %2137 = vst.msk [vmem:[%s2857_s27 + $0x58] sm:$0xff] %vm599_vm1, %v2121_v4  ;;  %v2123_v12 = vadd.f32 %v2107_v9, %v588_v7  ;;  %v2124_v13 = vadd.f32 %v2108_v11, %v589_v10  ;;  %v590_v14 = vld [vmem:[%s2842_s18 + $0x78] sm:$0xff]  ;;  %2552 = vmatprep.mubr.msk.f32.mxu0 %vm599_vm1, %v581_v51  ;;  %v1429_v4 = vld [vmem:[%s559_s26] sm:$0xff] }
  0x3b   : > { %v2109_v15 = vld [vmem:[%s2845_s29 + $0x78] sm:$0xff]  ;;  %v1434_v11 = vld [vmem:[%s559_s26 + $0x28] sm:$0xff] }
  0x3c   : > { %2138 = vst.msk [vmem:[%s2857_s27 + $0x60] sm:$0xff] %vm599_vm1, %v2122_v8  ;;  %v2125_v16 = vadd.f32 %v2109_v15, %v590_v14  ;;  %2139 = vst.msk [vmem:[%s2857_s27 + $0x68] sm:$0xff] %vm599_vm1, %v2123_v12  ;;  %v1431_v8 = vld [vmem:[%s559_s26 + $0x10] sm:$0xff]  ;;  %v1432_v9 = vld [vmem:[%s559_s26 + $0x18] sm:$0xff] }
  0x3d   : > { %2140 = vst.msk [vmem:[%s2857_s27 + $0x70] sm:$0xff] %vm599_vm1, %v2124_v13  ;;  %2553 = vmatmul.mubr.msk.f32.gmra.mrb[6].mxu0 %vm599_vm1, %v582_v53  ;;  %v1435_v12 = vld [vmem:[%s559_s26 + $0x30] sm:$0xff]  ;;  %v3073_v13 = vld [vmem:[%s559_s26 + $0x38] sm:$0xff] }
  0x3e   : > { %2141 = vst.msk [vmem:[%s2857_s27 + $0x78] sm:$0xff] %vm599_vm1, %v2125_v16  ;;  %2555 = vmatprep.mubr.msk.f32.mxu0 %vm599_vm1, %v583_v56 }
  0x41   : > { %2556 = vmatmul.mubr.msk.f32.gmra.mrb[8].mxu0 %vm599_vm1, %v584_v60 }
  0x42   : > { %2558 = vmatprep.mubr.msk.f32.mxu0 %vm599_vm1, %v585_v62 }
  0x45   : > { %2559 = vmatmul.mubr.msk.f32.gmra.mrb[10].mxu0 %vm599_vm1, %v586_v1 }
  0x46   : > { %2561 = vmatprep.mubr.msk.f32.mxu0 %vm599_vm1, %v587_v5  ;;  %v1430_v5 = vld [vmem:[%s559_s26 + $0x8] sm:$0xff] }
  0x49   : > { %2562 = vmatmul.mubr.msk.f32.gmra.mrb[12].mxu0 %vm599_vm1, %v588_v7 }
  0x4a   : > { %2564 = vmatprep.mubr.msk.f32.mxu0 %vm599_vm1, %v589_v10  ;;  %v1433_v10 = vld [vmem:[%s559_s26 + $0x20] sm:$0xff] }
  0x4d   : > { %2565 = vmatmul.mubr.msk.f32.gmra.mrb[14].mxu0 %vm599_vm1, %v590_v14 }
  0x4e   : > { %2609 = vmatprep.mubr.msk.f32.mxu0 %vm2699_vm2, %v2698_v17 }
 0x104   : > { %v2545_v18 = vpop.f32.mrb[0].mxu0 }
 0x105   : > { %v718_v19 = vpop.f32.mrb[1].mxu0  ;;  %v724_v44 = vadd.f32 %v2545_v18, %v2430_v27 }
 0x106   : > { %v719_v43 = vadd.f32 %v2430_v27, %v718_v19 }
 0x108   : > { %v2548_v20 = vpop.f32.mrb[2].mxu0 }
 0x109   : > { %v728_v21 = vpop.f32.mrb[3].mxu0  ;;  %v734_v46 = vadd.f32 %v2548_v20, %v2430_v27 }
 0x10a   : > { %v729_v45 = vadd.f32 %v2430_v27, %v728_v21 }
 0x10c   : > { %v2551_v22 = vpop.f32.mrb[4].mxu0 }
 0x10d   : > { %v738_v23 = vpop.f32.mrb[5].mxu0  ;;  %v744_v48 = vadd.f32 %v2551_v22, %v2430_v27 }
 0x10e   : > { %v739_v47 = vadd.f32 %v2430_v27, %v738_v23 }
 0x110   : > { %v2554_v24 = vpop.f32.mrb[6].mxu0 }
 0x111   : > { %v748_v25 = vpop.f32.mrb[7].mxu0  ;;  %v754_v50 = vadd.f32 %v2554_v24, %v2430_v27 }
 0x112   : > { %v749_v49 = vadd.f32 %v2430_v27, %v748_v25 }
 0x114   : > { %v2557_v26 = vpop.f32.mrb[8].mxu0 }
 0x115   : > { %v758_v28 = vpop.f32.mrb[9].mxu0  ;;  %v2941_v32 = vadd.f32 %v2557_v26, %v2430_v27 }
 0x116   : > { %v2937_v29 = vadd.f32 %v2430_v27, %v758_v28 }
 0x118   : > { %v2560_v30 = vpop.f32.mrb[10].mxu0  ;;  %798 = vrot.lane.b32.xlu0 %v2937_v29, %s2700_s21 }
 0x119   : > { %v768_v31 = vpop.f32.mrb[11].mxu0  ;;  %v2945_v34 = vadd.f32 %v2560_v30, %v2430_v27  ;;  %v2072_v30 = vld [vmem:[%s564_s17 + $0x10] sm:$0xff] }
 0x11a   : > { %v2943_v33 = vadd.f32 %v2430_v27, %v768_v31  ;;  %v2074_v31 = vld [vmem:[%s564_s17 + $0x20] sm:$0xff] }
 0x11c   : > { %v2563_v35 = vpop.f32.mrb[12].mxu0  ;;  %954 = vrot.lane.b32.xlu1 %v2943_v33, %s2700_s21  ;;  %876 = vrot.lane.b32.xlu0 %v2941_v32, %s2700_s21 }
 0x11d   : > { %v778_v36 = vpop.f32.mrb[13].mxu0  ;;  %v2953_v38 = vadd.f32 %v2563_v35, %v2430_v27 }
 0x11e   : > { %v2951_v37 = vadd.f32 %v2430_v27, %v778_v36  ;;  %v2076_v36 = vld [vmem:[%s564_s17 + $0x30] sm:$0xff] }
 0x120   : > { %v2566_v39 = vpop.f32.mrb[14].mxu0  ;;  %1032 = vrot.lane.b32.xlu1 %v2945_v34, %s2700_s21  ;;  %1110 = vrot.lane.b32.xlu0 %v2951_v37, %s2700_s21 }
 0x121   : > { %v788_v40 = vpop.f32.mrb[15].mxu0  ;;  %v2961_v42 = vadd.f32 %v2566_v39, %v2430_v27  ;;  %v2075_v39 = vld [vmem:[%s564_s17 + $0x28] sm:$0xff] }
 0x122   : > { %v2959_v41 = vadd.f32 %v2430_v27, %v788_v40  ;;  %v2077_v40 = vld [vmem:[%s564_s17 + $0x38] sm:$0xff] }
 0x124   : > { %1188 = vrot.lane.b32.xlu1 %v2953_v38, %s2700_s21  ;;  %1266 = vrot.lane.b32.xlu0 %v2959_v41, %s2700_s21 }
 0x128   : > { %1344 = vrot.lane.b32.xlu1 %v2961_v42, %s2700_s21  ;;  %1454 = vrot.lane.b32.xlu0 %v719_v43, %s2700_s21 }
 0x12c   : > { %1530 = vrot.lane.b32.xlu1 %v724_v44, %s2700_s21  ;;  %1606 = vrot.lane.b32.xlu0 %v729_v45, %s2700_s21 }
 0x130   : > { %1682 = vrot.lane.b32.xlu1 %v734_v46, %s2700_s21  ;;  %1758 = vrot.lane.b32.xlu0 %v739_v47, %s2700_s21 }
 0x134   : > { %1834 = vrot.lane.b32.xlu1 %v744_v48, %s2700_s21  ;;  %1910 = vrot.lane.b32.xlu0 %v749_v49, %s2700_s21 }
 0x138   : > { %1986 = vrot.lane.b32.xlu1 %v754_v50, %s2700_s21 }
 0x18a   : > { %v799_v51 = vpop.permute.xlu0 %798 }
 0x18b   : > { %2568 = vmatpush3.xpose.msk.msra.mxu1 %vm599_vm1, %v799_v51 }
 0x18c   : > { %2572 = vmatprep.subr.mxu1 %v2698_v17 }
 0x18e   : > { %v955_v52 = vpop.permute.xlu1 %954  ;;  %v877_v53 = vpop.permute.xlu0 %876  ;;  %2570 = vmatmul.mubr.msk.f32.vlgmr.msra.gmra.mrb[0].mxu1 %vm599_vm1, %v719_v43 }
 0x18f   : > { %2573 = vmatpush3.xpose.msk.msra.mxu1 %vm599_vm1, %v877_v53  ;;  %2574 = vmatprep.mubr.msk.f32.mxu1 %vm2699_vm2, %v2698_v17 }
 0x190   : > { %2577 = vmatprep.subr.mxu1 %v2698_v17 }
 0x192   : > { %v1033_v54 = vpop.permute.xlu1 %1032  ;;  %v1111_v55 = vpop.permute.xlu0 %1110  ;;  %2575 = vmatmul.mubr.msk.f32.vlgmr.msra.gmra.mrb[2].mxu1 %vm599_vm1, %v724_v44 }
 0x193   : > { %2578 = vmatpush3.xpose.msk.msra.mxu1 %vm599_vm1, %v955_v52  ;;  %2579 = vmatprep.mubr.msk.f32.mxu1 %vm2699_vm2, %v2698_v17 }
 0x194   : > { %2582 = vmatprep.subr.mxu1 %v2698_v17 }
 0x196   : > { %v1267_v56 = vpop.permute.xlu0 %1266  ;;  %2580 = vmatmul.mubr.msk.f32.vlgmr.msra.gmra.mrb[4].mxu1 %vm599_vm1, %v729_v45  ;;  %v1189_v57 = vpop.permute.xlu1 %1188 }
 0x197   : > { %2583 = vmatpush3.xpose.msk.msra.mxu1 %vm599_vm1, %v1033_v54  ;;  %2584 = vmatprep.mubr.msk.f32.mxu1 %vm2699_vm2, %v2698_v17 }
 0x198   : > { %2587 = vmatprep.subr.mxu1 %v2698_v17 }
 0x19a   : > { %v1455_v58 = vpop.permute.xlu0 %1454  ;;  %2585 = vmatmul.mubr.msk.f32.vlgmr.msra.gmra.mrb[6].mxu1 %vm599_vm1, %v734_v46  ;;  %v1345_v59 = vpop.permute.xlu1 %1344 }
 0x19b   : > { %2588 = vmatpush3.xpose.msk.msra.mxu1 %vm599_vm1, %v1111_v55  ;;  %2608 = vmatpush3.xpose.msk.msra.mxu0 %vm599_vm1, %v1455_v58 }
 0x19c   : > { %2589 = vmatprep.mubr.msk.f32.mxu1 %vm2699_vm2, %v2698_v17  ;;  %2617 = vmatprep.subr.mxu0 %v2698_v17 }
 0x19d   : > { %2592 = vmatprep.subr.mxu1 %v2698_v17 }
 0x19e   : > { %2610 = vmatmul.mubr.msk.f32.vlgmr.msra.gmra.mrb[16].mxu0 %vm599_vm1, %v2937_v29  ;;  %v1607_v60 = vpop.permute.xlu0 %1606  ;;  %2590 = vmatmul.mubr.msk.f32.vlgmr.msra.gmra.mrb[8].mxu1 %vm599_vm1, %v739_v47  ;;  %v1531_v62 = vpop.permute.xlu1 %1530  ;;  %v2070_v29 = vld [vmem:[%s564_s17] sm:$0xff] }
 0x19f   : > { %2593 = vmatpush3.xpose.msk.msra.mxu1 %vm599_vm1, %v1189_v57  ;;  %2618 = vmatpush3.xpose.msk.msra.mxu0 %vm599_vm1, %v1607_v60 }
 0x1a0   : > { %2594 = vmatprep.mubr.msk.f32.mxu1 %vm2699_vm2, %v2698_v17  ;;  %2619 = vmatprep.mubr.msk.f32.mxu0 %vm2699_vm2, %v2698_v17 }
 0x1a1   : > { %2627 = vmatprep.subr.mxu0 %v2698_v17  ;;  %2597 = vmatprep.subr.mxu1 %v2698_v17 }
 0x1a2   : > { %2620 = vmatmul.mubr.msk.f32.vlgmr.msra.gmra.mrb[18].mxu0 %vm599_vm1, %v2943_v33  ;;  %v1759_v61 = vpop.permute.xlu0 %1758  ;;  %2595 = vmatmul.mubr.msk.f32.vlgmr.msra.gmra.mrb[10].mxu1 %vm599_vm1, %v744_v48  ;;  %v1683_v0 = vpop.permute.xlu1 %1682 }
 0x1a3   : > { %2598 = vmatpush3.xpose.msk.msra.mxu1 %vm599_vm1, %v1267_v56  ;;  %2628 = vmatpush3.xpose.msk.msra.mxu0 %vm599_vm1, %v1759_v61 }
 0x1a4   : > { %2599 = vmatprep.mubr.msk.f32.mxu1 %vm2699_vm2, %v2698_v17  ;;  %2629 = vmatprep.mubr.msk.f32.mxu0 %vm2699_vm2, %v2698_v17 }
 0x1a5   : > { %2637 = vmatprep.subr.mxu0 %v2698_v17  ;;  %2602 = vmatprep.subr.mxu1 %v2698_v17 }
 0x1a6   : > { %2630 = vmatmul.mubr.msk.f32.vlgmr.msra.gmra.mrb[20].mxu0 %vm599_vm1, %v2951_v37  ;;  %v1911_v63 = vpop.permute.xlu0 %1910  ;;  %2600 = vmatmul.mubr.msk.f32.vlgmr.msra.gmra.mrb[12].mxu1 %vm599_vm1, %v749_v49  ;;  %v1835_v1 = vpop.permute.xlu1 %1834  ;;  %v2071_v37 = vld [vmem:[%s564_s17 + $0x8] sm:$0xff] }
 0x1a7   : > { %2603 = vmatpush3.xpose.msk.msra.mxu1 %vm599_vm1, %v1345_v59  ;;  %2638 = vmatpush3.xpose.msk.msra.mxu0 %vm599_vm1, %v1911_v63 }
 0x1a8   : > { %2604 = vmatprep.mubr.msk.f32.mxu1 %vm2699_vm2, %v2698_v17  ;;  %2639 = vmatprep.mubr.msk.f32.mxu0 %vm2699_vm2, %v2698_v17 }
 0x1a9   : > { %2612 = vmatprep.subr.mxu1 %v2698_v17 }
 0x1aa   : > { %2605 = vmatmul.mubr.msk.f32.vlgmr.msra.gmra.mrb[14].mxu1 %vm599_vm1, %v754_v50  ;;  %2640 = vmatmul.mubr.msk.f32.vlgmr.msra.gmra.mrb[22].mxu0 %vm599_vm1, %v2959_v41  ;;  %v1987_v2 = vpop.permute.xlu1 %1986 }
 0x1ab   : > { %2613 = vmatpush3.xpose.msk.msra.mxu1 %vm599_vm1, %v1531_v62  ;;  %2614 = vmatprep.mubr.msk.f32.mxu1 %vm2699_vm2, %v2698_v17 }
 0x1ac   : > { %2622 = vmatprep.subr.mxu1 %v2698_v17 }
 0x1ae   : > { %2615 = vmatmul.mubr.msk.f32.vlgmr.msra.gmra.mrb[16].mxu1 %vm599_vm1, %v2941_v32 }
 0x1af   : > { %2623 = vmatpush3.xpose.msk.msra.mxu1 %vm599_vm1, %v1683_v0  ;;  %2624 = vmatprep.mubr.msk.f32.mxu1 %vm2699_vm2, %v2698_v17 }
 0x1b0   : > { %2632 = vmatprep.subr.mxu1 %v2698_v17 }
 0x1b2   : > { %2625 = vmatmul.mubr.msk.f32.vlgmr.msra.gmra.mrb[18].mxu1 %vm599_vm1, %v2945_v34 }
 0x1b3   : > { %2633 = vmatpush3.xpose.msk.msra.mxu1 %vm599_vm1, %v1835_v1  ;;  %2634 = vmatprep.mubr.msk.f32.mxu1 %vm2699_vm2, %v2698_v17 }
 0x1b4   : > { %2642 = vmatprep.subr.mxu1 %v2698_v17 }
 0x1b6   : > { %2635 = vmatmul.mubr.msk.f32.vlgmr.msra.gmra.mrb[20].mxu1 %vm599_vm1, %v2953_v38  ;;  %v2073_v38 = vld [vmem:[%s564_s17 + $0x18] sm:$0xff] }
 0x1b7   : > { %2643 = vmatpush3.xpose.msk.msra.mxu1 %vm599_vm1, %v1987_v2  ;;  %2644 = vmatprep.mubr.msk.f32.mxu1 %vm2699_vm2, %v2698_v17 }
 0x1ba   : > { %2645 = vmatmul.mubr.msk.f32.vlgmr.msra.gmra.mrb[22].mxu1 %vm599_vm1, %v2961_v42 }
 0x261   : > { %v871_v3 = vpop.f32.mrb[0].mxu1 }
 0x262   : > { %v1421_v6 = vmul.f32 0.25, %v871_v3  ;;  %v2571_v7 = vpop.f32.mrb[1].mxu1 }
 0x264   : > { %v1437_v14 = vadd.f32 %v1429_v4, %v1421_v6 }
 0x265   : > { %v949_v15 = vpop.f32.mrb[2].mxu1 }
 0x266   : > { %v1422_v16 = vmul.f32 0.25, %v949_v15  ;;  %v2576_v17 = vpop.f32.mrb[3].mxu1  ;;  %1446 = vst.msk [vmem:[%s3071_s13] sm:$0xff] %vm1445_vm3, %v1437_v14 }
 0x268   : > { %v1438_v18 = vadd.f32 %v1430_v5, %v1422_v16 }
 0x269   : > { %v1027_v19 = vpop.f32.mrb[4].mxu1 }
 0x26a   : > { %v1423_v20 = vmul.f32 0.25, %v1027_v19  ;;  %v2581_v21 = vpop.f32.mrb[5].mxu1  ;;  %1447 = vst.msk [vmem:[%s3071_s13 + $0x8] sm:$0xff] %vm1445_vm3, %v1438_v18  ;;  %v2219_v19 = vld [vmem:[%s2857_s27] sm:$0xff] (%p2781_p5) }
 0x26b   : > { %v2223_v21 = vld [vmem:[%s2857_s27 + $0x10] sm:$0xff] (%p2781_p5)  ;;  %2220 = vst [vmem:[%s2161_s23] sm:$0xff] (%p2781_p5), %v2219_v19 }
 0x26c   : > { %v1439_v22 = vadd.f32 %v1431_v8, %v1423_v20  ;;  %v2221_v20 = vld [vmem:[%s2857_s27 + $0x8] sm:$0xff] (%p2781_p5)  ;;  %2224 = vst [vmem:[%s2161_s23 + $0x10] sm:$0xff] (%p2781_p5), %v2223_v21 }
 0x26d   : > { %v1105_v23 = vpop.f32.mrb[6].mxu1  ;;  %2222 = vst [vmem:[%s2161_s23 + $0x8] sm:$0xff] (%p2781_p5), %v2221_v20 }
 0x26e   : > { %v1424_v24 = vmul.f32 0.25, %v1105_v23  ;;  %v2586_v25 = vpop.f32.mrb[7].mxu1  ;;  %1448 = vst.msk [vmem:[%s3071_s13 + $0x10] sm:$0xff] %vm1445_vm3, %v1439_v22  ;;  %v2225_v22 = vld [vmem:[%s2857_s27 + $0x18] sm:$0xff] (%p2781_p5)  ;;  %v2227_v23 = vld [vmem:[%s2857_s27 + $0x20] sm:$0xff] (%p2781_p5) }
 0x26f   : > { %2226 = vst [vmem:[%s2161_s23 + $0x18] sm:$0xff] (%p2781_p5), %v2225_v22  ;;  %2228 = vst [vmem:[%s2161_s23 + $0x20] sm:$0xff] (%p2781_p5), %v2227_v23  ;;  %v2231_v25 = vld [vmem:[%s2857_s27 + $0x30] sm:$0xff] (%p2781_p5) }
 0x270   : > { %v1440_v26 = vadd.f32 %v1432_v9, %v1424_v24  ;;  %v2229_v24 = vld [vmem:[%s2857_s27 + $0x28] sm:$0xff] (%p2781_p5)  ;;  %2232 = vst [vmem:[%s2161_s23 + $0x30] sm:$0xff] (%p2781_p5), %v2231_v25 }
 0x271   : > { %v1183_v27 = vpop.f32.mrb[8].mxu1  ;;  %v1526_v28 = vpop.f32.mrb[16].mxu0  ;;  %2230 = vst [vmem:[%s2161_s23 + $0x28] sm:$0xff] (%p2781_p5), %v2229_v24 }
 0x272   : > { %v1425_v32 = vmul.f32 0.25, %v1183_v27  ;;  %v2062_v33 = vmul.f32 0.25, %v1526_v28  ;;  %v2591_v34 = vpop.f32.mrb[9].mxu1  ;;  %v2611_v35 = vpop.f32.mrb[17].mxu0  ;;  %1449 = vst.msk [vmem:[%s3071_s13 + $0x18] sm:$0xff] %vm1445_vm3, %v1440_v26  ;;  %v2233_v26 = vld [vmem:[%s2857_s27 + $0x38] sm:$0xff] (%p2781_p5) }
 0x273   : > { %v2235_v27 = vld [vmem:[%s2857_s27 + $0x40] sm:$0xff] (%p2781_p5)  ;;  %2234 = vst [vmem:[%s2161_s23 + $0x38] sm:$0xff] (%p2781_p5), %v2233_v26  ;;  %v2237_v28 = vld [vmem:[%s2857_s27 + $0x48] sm:$0xff] (%p2781_p5)  ;;  %v2249_v34 = vld [vmem:[%s2857_s27 + $0x78] sm:$0xff] (%p2781_p5) }
 0x274   : > { %v1441_v41 = vadd.f32 %v1433_v10, %v1425_v32  ;;  %v2078_v42 = vadd.f32 %v2070_v29, %v2062_v33  ;;  %2236 = vst [vmem:[%s2161_s23 + $0x80] sm:$0xff] (%p2781_p5), %v2235_v27  ;;  %v2239_v29 = vld [vmem:[%s2857_s27 + $0x50] sm:$0xff] (%p2781_p5)  ;;  %2238 = vst [vmem:[%s2161_s23 + $0x88] sm:$0xff] (%p2781_p5), %v2237_v28  ;;  %v2245_v32 = vld [vmem:[%s2857_s27 + $0x68] sm:$0xff] (%p2781_p5) }
 0x275   : > { %v1261_v43 = vpop.f32.mrb[10].mxu1  ;;  %v1678_v44 = vpop.f32.mrb[18].mxu0  ;;  %2240 = vst [vmem:[%s2161_s23 + $0x90] sm:$0xff] (%p2781_p5), %v2239_v29  ;;  %v2247_v33 = vld [vmem:[%s2857_s27 + $0x70] sm:$0xff] (%p2781_p5)  ;;  %2246 = vst [vmem:[%s2161_s23 + $0xa8] sm:$0xff] (%p2781_p5), %v2245_v32 }
 0x276   : > { %v1426_v45 = vmul.f32 0.25, %v1261_v43  ;;  %v2064_v46 = vmul.f32 0.25, %v1678_v44  ;;  %v2596_v47 = vpop.f32.mrb[11].mxu1  ;;  %v2621_v48 = vpop.f32.mrb[19].mxu0  ;;  %1450 = vst.msk [vmem:[%s3071_s13 + $0x20] sm:$0xff] %vm1445_vm3, %v1441_v41  ;;  %2086 = vst.msk [vmem:[%s3091_s19] sm:$0xff] %vm1445_vm3, %v2078_v42 }
 0x277   : > { %2248 = vst [vmem:[%s2161_s23 + $0xb0] sm:$0xff] (%p2781_p5), %v2247_v33  ;;  %2250 = vst [vmem:[%s2161_s23 + $0xb8] sm:$0xff] (%p2781_p5), %v2249_v34 }
 0x278   : > { %v1442_v49 = vadd.f32 %v1434_v11, %v1426_v45  ;;  %v2080_v50 = vadd.f32 %v2072_v30, %v2064_v46  ;;  %v2241_v30 = vld [vmem:[%s2857_s27 + $0x58] sm:$0xff] (%p2781_p5) }
 0x279   : > { %v1339_v51 = vpop.f32.mrb[12].mxu1  ;;  %v1830_v52 = vpop.f32.mrb[20].mxu0  ;;  %2242 = vst [vmem:[%s2161_s23 + $0x98] sm:$0xff] (%p2781_p5), %v2241_v30 }
 0x27a   : > { %v1427_v53 = vmul.f32 0.25, %v1339_v51  ;;  %v2066_v54 = vmul.f32 0.25, %v1830_v52  ;;  %v2601_v55 = vpop.f32.mrb[13].mxu1  ;;  %v2631_v56 = vpop.f32.mrb[21].mxu0  ;;  %1451 = vst.msk [vmem:[%s3071_s13 + $0x28] sm:$0xff] %vm1445_vm3, %v1442_v49  ;;  %2088 = vst.msk [vmem:[%s3091_s19 + $0x10] sm:$0xff] %vm1445_vm3, %v2080_v50 }
 0x27c   : > { %v1443_v57 = vadd.f32 %v1435_v12, %v1427_v53  ;;  %v2082_v58 = vadd.f32 %v2074_v31, %v2066_v54  ;;  %v2243_v31 = vld [vmem:[%s2857_s27 + $0x60] sm:$0xff] (%p2781_p5) }
 0x27d   : > { %v1417_v59 = vpop.f32.mrb[14].mxu1  ;;  %v1982_v60 = vpop.f32.mrb[22].mxu0  ;;  %2244 = vst [vmem:[%s2161_s23 + $0xa0] sm:$0xff] (%p2781_p5), %v2243_v31 }
 0x27e   : > { %v1428_v61 = vmul.f32 0.25, %v1417_v59  ;;  %1452 = vst.msk [vmem:[%s3071_s13 + $0x30] sm:$0xff] %vm1445_vm3, %v1443_v57  ;;  %v2068_v62 = vmul.f32 0.25, %v1982_v60  ;;  %v2606_v63 = vpop.f32.mrb[15].mxu1  ;;  %v2641_v0 = vpop.f32.mrb[23].mxu0  ;;  %2090 = vst.msk [vmem:[%s3091_s19 + $0x20] sm:$0xff] %vm1445_vm3, %v2082_v58 }
 0x280   : > { %v1444_v1 = vadd.f32 %v3073_v13, %v1428_v61  ;;  %v2084_v2 = vadd.f32 %v2076_v36, %v2068_v62 }
 0x281   : > { %v1602_v3 = vpop.f32.mrb[16].mxu1 }
 0x282   : > { %1453 = vst.msk [vmem:[%s3071_s13 + $0x38] sm:$0xff] %vm1445_vm3, %v1444_v1  ;;  %v2063_v4 = vmul.f32 0.25, %v1602_v3  ;;  %v2616_v5 = vpop.f32.mrb[17].mxu1  ;;  %2092 = vst.msk [vmem:[%s3091_s19 + $0x30] sm:$0xff] %vm1445_vm3, %v2084_v2 }
 0x284   : > { %v2079_v6 = vadd.f32 %v2071_v37, %v2063_v4 }
 0x285   : > { %v1754_v7 = vpop.f32.mrb[18].mxu1 }
 0x286   : > { %v2065_v8 = vmul.f32 0.25, %v1754_v7  ;;  %v2626_v9 = vpop.f32.mrb[19].mxu1  ;;  %2087 = vst.msk [vmem:[%s3091_s19 + $0x8] sm:$0xff] %vm1445_vm3, %v2079_v6 }
 0x288   : > { %v2081_v10 = vadd.f32 %v2073_v38, %v2065_v8 }
 0x289   : > { %v1906_v11 = vpop.f32.mrb[20].mxu1 }
 0x28a   : > { %v2067_v12 = vmul.f32 0.25, %v1906_v11  ;;  %v2636_v13 = vpop.f32.mrb[21].mxu1  ;;  %2089 = vst.msk [vmem:[%s3091_s19 + $0x18] sm:$0xff] %vm1445_vm3, %v2081_v10 }
 0x28c   : > { %v2083_v14 = vadd.f32 %v2075_v39, %v2067_v12  ;;  %2158 = sbr.rel (!%p2781_p5) target bundleno = 659 (0x293), region = 124 }
 0x28d   : > { %v2058_v15 = vpop.f32.mrb[22].mxu1 }
 0x28e   : > { %v2069_v16 = vmul.f32 0.25, %v2058_v15  ;;  %2091 = vst.msk [vmem:[%s3091_s19 + $0x28] sm:$0xff] %vm1445_vm3, %v2083_v14  ;;  %v2646_v17 = vpop.f32.mrb[23].mxu1 }
 0x290   : > { %v2085_v18 = vadd.f32 %v2077_v40, %v2069_v16 }
 0x292   : > { %2093 = vst.msk [vmem:[%s3091_s19 + $0x38] sm:$0xff] %vm1445_vm3, %v2085_v18 }
 0x293 PF: > { %p16_p11 = scmp.ge.s32.totalorder %s2765_s9, 4   ;;  %s3161_s27 = smov %s2692_s28 }
 0x294   : > { %s3162_s28 = smov %s2775_s12  ;;  %s3163_s29 = smov %s2765_s9 }
 0x295   :  { %18 = sbr.rel (!%p16_p11) target bundleno = 2 (0x2), region = 231 }

</bundles_post_ra>
